<compile_context>
chip_gen: v7x
topology: tpu7x:2x2x1
jax: 0.10.0
libtpu: 0.0.40
codegen_flags: <defaults>
</compile_context>

<pallas_src>
import functools

import jax
import jax.numpy as jnp
from jax.experimental import pallas as pl
from jax.experimental.pallas import tpu as pltpu

BN_EPS = 1e-5
LANE = 128               # TPU lane width — channel dims padded to this
MIB = 1024 * 1024


# ------------------------------ small helpers --------------------------------

def _round_up(x, m):
    return ((x + m - 1) // m) * m


def _tpu_config():
    """Generation-aware VMEM budget / megacore preference."""
    vmem = None
    try:
        info = pltpu.get_tpu_info()
        vmem = getattr(info, "vmem_capacity_bytes", None)
    except Exception:
        vmem = None
    if vmem is None:
        vmem = 64 * MIB                      # conservative default (v7x-sized)
    big_vmem = vmem >= 100 * MIB             # v5e / v6e: 128 MiB physical VMEM
    return {
        "vmem_limit": (96 if big_vmem else 48) * MIB,
        "vmem_budget": (64 if big_vmem else 28) * MIB,
        # Only v7x-class chips have 2 TensorCores; only there is the
        # ">=2 grid steps" preference worth shrinking tiles for.
        "two_cores": not big_vmem,
    }


def _fold_bn(bn):
    gamma, beta, mean, var = bn
    scale = gamma / jnp.sqrt(var + BN_EPS)   # f32
    bias = beta - mean * scale
    return scale, bias


def _prep_1x1(w, bn, cin_p, cout_p):
    """Fold BN scale into a 1x1 conv weight (f32), pad channels, cast to bf16."""
    cout, cin = w.shape[:2]
    scale, bias = _fold_bn(bn)
    wm = w.reshape(cout, cin).T * scale[None, :]                       # (Cin, Cout)
    wm = jnp.pad(wm, ((0, cin_p - cin), (0, cout_p - cout))).astype(jnp.bfloat16)
    b = jnp.pad(bias, (0, cout_p - cout)).reshape(1, cout_p).astype(jnp.float32)
    return wm, b


def _prep_3x3(w, bn, cin_p, cout_p):
    """Fold BN scale into a 3x3 conv weight, layout (9, Cin, Cout), bf16."""
    cout, cin = w.shape[:2]
    scale, bias = _fold_bn(bn)
    wt = jnp.transpose(w, (2, 3, 1, 0)) * scale[None, None, None, :]   # (3,3,Cin,Cout)
    wt = jnp.pad(wt, ((0, 0), (0, 0), (0, cin_p - cin), (0, cout_p - cout)))
    wt = wt.reshape(9, cin_p, cout_p).astype(jnp.bfloat16)
    b = jnp.pad(bias, (0, cout_p - cout)).reshape(1, cout_p).astype(jnp.float32)
    return wt, b


# ------------------------------ conv1: 1x1 matmul ------------------------------

def _mm_bias_relu_kernel(x_ref, w_ref, b_ref, o_ref):
    # (tm, K)bf16 @ (K, Cout)bf16 on the MXU, f32 accumulate, +bias, ReLU.
    acc = jnp.dot(x_ref[...], w_ref[...], preferred_element_type=jnp.float32)
    o_ref[...] = jnp.maximum(acc + b_ref[...], 0.0).astype(o_ref.dtype)


def _pick_row_tile(m, per_row_bytes, budget_bytes, *, two_cores):
    """MXU-friendly row tile: never below 128 rows just to add grid steps; a
    single grid step (m rounded to 8) when m is small; split across the two
    v7x TensorCores only when each half still has >= 256 rows."""
    if m <= 256:
        return max(8, _round_up(m, 8))
    tm = 128
    for cand in (1024, 512, 256):
        if cand * per_row_bytes <= budget_bytes:
            tm = cand
            break
    if two_cores and m >= 512 and m <= tm:
        tm = max(256, _round_up(-(-m // 2), 128))
    if m <= tm:
        return _round_up(m, 8)
    return tm


def _matmul_bias_relu(x, w, b, cfg):
    """y = relu(x @ w + b) with a tiled MXU kernel (BN scale folded into w)."""
    M, K = x.shape
    Cout = w.shape[1]
    resident = 2 * (K * Cout * 2 + Cout * 4)            # double-buffered weight+bias
    if resident > cfg["vmem_limit"]:
        raise ValueError("1x1-conv weights do not fit in VMEM; add channel tiling")
    per_row = 2 * (2 * K + 2 * Cout)                    # bf16 in/out tiles, x2 buffers
    tm = _pick_row_tile(M, per_row, cfg["vmem_budget"] - resident,
                        two_cores=cfg["two_cores"])
    Mp = _round_up(M, tm)
    if Mp != M:
        x = jnp.pad(x, ((0, Mp - M), (0, 0)))

    flops = 2 * Mp * K * Cout
    bytes_acc = Mp * K * 2 + K * Cout * 2 + Cout * 4 + Mp * Cout * 2

    out = pl.pallas_call(
        _mm_bias_relu_kernel,
        out_shape=jax.ShapeDtypeStruct((Mp, Cout), jnp.bfloat16),
        grid=(Mp // tm,),
        in_specs=[
            pl.BlockSpec((tm, K), lambda i: (i, 0)),        # activation tile
            pl.BlockSpec((K, Cout), lambda i: (0, 0)),      # resident weight
            pl.BlockSpec((1, Cout), lambda i: (0, 0)),      # bn bias
        ],
        out_specs=pl.BlockSpec((tm, Cout), lambda i: (i, 0)),
        compiler_params=pltpu.CompilerParams(
            dimension_semantics=("parallel",),
            vmem_limit_bytes=cfg["vmem_limit"]),
        cost_estimate=pl.CostEstimate(flops=flops, transcendentals=0,
                                      bytes_accessed=bytes_acc),
    )(x, w, b)
    return out[:M]


# --------------------- fused conv2(3x3) + conv3(1x1) + residual ----------------

def _conv2_accumulate(xw_ref, w2_ref, acc_ref, *, stride, rows, wo_p):
    """3x3 conv as 9 large matmuls: taps are the OUTER loop, M = rows*wo_p."""
    s = stride
    first = True
    for dh in range(3):
        ph_r, oh = dh % s, dh // s
        for dw in range(3):
            ph_c, ow = dw % s, dw // s
            # static contiguous-row slice of the (rows+halo, wph, C) window
            lhs = xw_ref[ph_r * s + ph_c, oh:oh + rows, ow:ow + wo_p, :]
            lhs = lhs.reshape(rows * wo_p, lhs.shape[-1])
            contrib = jnp.dot(lhs, w2_ref[dh * 3 + dw],
                              preferred_element_type=jnp.float32)
            if first:
                acc_ref[...] = contrib
                first = False
            else:
                acc_ref[...] += contrib


def _fused_id_kernel(xw_ref, w2_ref, b2_ref, w3_ref, b3_ref, r_ref, o_ref,
                     acc_ref, *, stride, rows, wo_p):
    # conv2+bn2+relu -> conv3+bn3 -> (+identity residual) -> relu, all in VMEM.
    _conv2_accumulate(xw_ref, w2_ref, acc_ref, stride=stride, rows=rows, wo_p=wo_p)
    h = jnp.maximum(acc_ref[...] + b2_ref[...], 0.0).astype(jnp.bfloat16)
    y = jnp.dot(h, w3_ref[...], preferred_element_type=jnp.float32) + b3_ref[...]
    y = y + r_ref[...].astype(jnp.float32)
    o_ref[...] = jnp.maximum(y, 0.0).astype(o_ref.dtype)


def _fused_ds_kernel(xw_ref, w2_ref, b2_ref, w3_ref, b3_ref, xs_ref, wd_ref,
                     bd_ref, o_ref, acc_ref, *, stride, rows, wo_p):
    # Same as above, but the residual goes through the fused 1x1 downsample.
    _conv2_accumulate(xw_ref, w2_ref, acc_ref, stride=stride, rows=rows, wo_p=wo_p)
    h = jnp.maximum(acc_ref[...] + b2_ref[...], 0.0).astype(jnp.bfloat16)
    y = jnp.dot(h, w3_ref[...], preferred_element_type=jnp.float32) + b3_ref[...]
    y = y + (jnp.dot(xs_ref[...], wd_ref[...], preferred_element_type=jnp.float32)
             + bd_ref[...])
    o_ref[...] = jnp.maximum(y, 0.0).astype(o_ref.dtype)


def _pick_conv_rows(ho, wo_p, halo, wph_p, cin, c2, c4, cres, n_ph, budget):
    """Output rows per block: target M = rows*wo_p >= 256, within VMEM budget,
    preferring rows | Ho so no padded garbage rows are written back."""
    target = 256
    r = max(1, min(ho, -(-target // wo_p)))

    def step_bytes(rr):
        win = 2 * n_ph * (rr + halo) * wph_p * cin * 2   # double-buffered window
        res = 2 * rr * wo_p * cres * 2                    # residual tile
        out = 2 * rr * wo_p * c4 * 2                      # output tile
        acc = rr * wo_p * c2 * 4                          # f32 scratch
        return win + res + out + acc

    while r > 1 and step_bytes(r) > budget:
        r -= 1
    for cand in range(r, min(ho, 2 * r) + 1):
        if ho % cand == 0 and step_bytes(cand) <= budget:
            return cand
    return r


def _conv2_conv3(y1, x, w2, b2, w3, b3, wd, bd, stride, cfg):
    """Fused conv2(3x3,pad=1,stride)+bn2+relu -> conv3(1x1)+bn3 -> +residual -> relu.

    y1: (N, H, W, C) bf16 conv1 output (lane-padded channels).
    x : (N, H, W, Cin_p) bf16 block input (residual source).
    wd/bd: folded downsample 1x1 weight/bias, or None for the identity residual.
    Returns (N, Ho, Wo, C4) bf16.
    """
    n, h, w, c = y1.shape
    s = stride
    c2 = w2.shape[-1]
    c4 = w3.shape[-1]
    ho = (h - 1) // s + 1
    wo = (w - 1) // s + 1
    wo_p = _round_up(wo, 8)          # sublane-aligned output width (cheap reshape)
    halo = 2 // s                    # extra window rows/cols per tile (2 for s=1, 1 for s=2)
    wph_p = wo_p + halo
    n_ph = s * s

    # Residual source on the output spatial grid.
    if wd is None:
        assert x.shape[-1] == c4
        res_src = x                                   # identity: stride 1
    else:
        # TODO(synk): fold this strided slice into the kernel via a strided DMA.
        res_src = x[:, ::s, ::s, :]
    cres = res_src.shape[-1]

    resident = 2 * (w2.size * 2 + w3.size * 2
                    + (wd.size * 2 if wd is not None else 0)
                    + (c2 + 2 * c4) * 4)
    if resident > cfg["vmem_limit"]:
        raise ValueError("conv2/conv3 weights do not fit in VMEM; add channel tiling")

    rows = _pick_conv_rows(ho, wo_p, halo, wph_p, c, c2, c4, cres, n_ph,
                           cfg["vmem_budget"] - resident)
    tb = -(-ho // rows)
    ho_p = tb * rows
    m = rows * wo_p                  # matmul rows per grid step

    # ---- pad + (stride-aware) phase-decompose + window y1 so every 3x3 tap is
    #      a static contiguous slice of one (rows+halo, wph_p, C) block ----
    hp = (ho_p + halo) * s
    wp = wph_p * s
    xp = jnp.pad(y1, ((0, 0), (1, hp - h - 1), (1, wp - w - 1), (0, 0)))
    if s == 1:
        xph = xp[:, None]                                            # (N,1,Hph,Wph,C)
    else:
        xph = xp.reshape(n, hp // s, s, wp // s, s, c)
        xph = jnp.transpose(xph, (0, 2, 4, 1, 3, 5))
        xph = xph.reshape(n, n_ph, hp // s, wp // s, c)
    win_rows = (jnp.arange(tb) * rows)[:, None] + jnp.arange(rows + halo)[None, :]
    xw = jnp.take(xph, win_rows, axis=2)           # (N, n_ph, Tb, rows+halo, Wph, C)

    # Residual, padded to the (padded) output grid, rows flattened lane-dense.
    res = jnp.pad(res_src, ((0, 0), (0, ho_p - res_src.shape[1]),
                            (0, wo_p - res_src.shape[2]), (0, 0)))
    res = res.reshape(n, ho_p * wo_p, cres)

    xw_spec = pl.BlockSpec((None, n_ph, None, rows + halo, wph_p, c),
                           lambda i, t: (i, 0, t, 0, 0, 0))
    w2_spec = pl.BlockSpec((9, c, c2), lambda i, t: (0, 0, 0))
    b2_spec = pl.BlockSpec((1, c2), lambda i, t: (0, 0))
    w3_spec = pl.BlockSpec((c2, c4), lambda i, t: (0, 0))
    b3_spec = pl.BlockSpec((1, c4), lambda i, t: (0, 0))
    res_spec = pl.BlockSpec((None, m, cres), lambda i, t: (i, t, 0))
    out_spec = pl.BlockSpec((None, m, c4), lambda i, t: (i, t, 0))

    flops = 2 * n * ho_p * wo_p * (9 * c * c2 + c2 * c4
                                   + (cres * c4 if wd is not None else 0))
    bytes_acc = (xw.size * 2 + res.size * 2 + w2.size * 2 + b2.size * 4
                 + w3.size * 2 + b3.size * 4 + n * ho_p * wo_p * c4 * 2
                 + ((wd.size * 2 + bd.size * 4) if wd is not None else 0))

    if wd is None:
        kernel = functools.partial(_fused_id_kernel, stride=s, rows=rows, wo_p=wo_p)
        args = (xw, w2, b2, w3, b3, res)
        in_specs = [xw_spec, w2_spec, b2_spec, w3_spec, b3_spec, res_spec]
    else:
        kernel = functools.partial(_fused_ds_kernel, stride=s, rows=rows, wo_p=wo_p)
        wd_spec = pl.BlockSpec((cres, c4), lambda i, t: (0, 0))
        bd_spec = pl.BlockSpec((1, c4), lambda i, t: (0, 0))
        args = (xw, w2, b2, w3, b3, res, wd, bd)
        in_specs = [xw_spec, w2_spec, b2_spec, w3_spec, b3_spec,
                    res_spec, wd_spec, bd_spec]

    out = pl.pallas_call(
        kernel,
        out_shape=jax.ShapeDtypeStruct((n, ho_p * wo_p, c4), jnp.bfloat16),
        grid=(n, tb),
        in_specs=in_specs,
        out_specs=out_spec,
        scratch_shapes=[pltpu.VMEM((m, c2), jnp.float32)],
        compiler_params=pltpu.CompilerParams(
            dimension_semantics=("parallel", "parallel"),
            vmem_limit_bytes=cfg["vmem_limit"]),
        cost_estimate=pl.CostEstimate(flops=flops, transcendentals=0,
                                      bytes_accessed=bytes_acc),
    )(*args)

    out = out.reshape(n, ho_p, wo_p, c4)[:, :ho, :wo, :]
    return out


# ------------------------------ Bottleneck forward -----------------------------

@functools.partial(jax.jit, static_argnames=("stride",))
def bottleneck_forward(x_nchw, params, downsample=None, *, stride=1):
    """Pallas implementation of Bottleneck.forward (inference-mode BN)."""
    assert stride in (1, 2), "ResNet Bottleneck only uses stride 1 or 2"
    cfg = _tpu_config()

    n, cin, h, w = x_nchw.shape
    planes = params["w1"].shape[0]
    cout = 4 * planes
    if downsample is None:
        assert stride == 1 and cin == cout, (
            "identity residual requires stride == 1 and inplanes == 4*planes")

    cin_p = _round_up(cin, LANE)
    pln_p = _round_up(planes, LANE)
    c4_p = _round_up(cout, LANE)

    # NHWC, lane-dense channel padding, bf16 activations for the MXU.
    # TODO(synk): when chaining blocks keep NHWC + bf16 end-to-end.
    x = jnp.transpose(x_nchw, (0, 2, 3, 1))
    x = jnp.pad(x, ((0, 0), (0, 0), (0, 0), (0, cin_p - cin))).astype(jnp.bfloat16)

    # --- conv1 (1x1) + bn1 + relu: row matmul, BN scale folded into W ---
    w1, b1 = _prep_1x1(params["w1"], params["bn1"], cin_p, pln_p)
    y1 = _matmul_bias_relu(x.reshape(n * h * w, cin_p), w1, b1, cfg)
    y1 = y1.reshape(n, h, w, pln_p)

    # --- conv2 (3x3) + bn2 + relu + conv3 (1x1) + bn3 + residual + relu, fused ---
    w2, b2 = _prep_3x3(params["w2"], params["bn2"], pln_p, pln_p)
    w3, b3 = _prep_1x1(params["w3"], params["bn3"], pln_p, c4_p)
    if downsample is None:
        wd = bd = None
    else:
        wd, bd = _prep_1x1(downsample["w"], downsample["bn"], cin_p, c4_p)
    out = _conv2_conv3(y1, x, w2, b2, w3, b3, wd, bd, stride, cfg)

    out = out[..., :cout]
    return jnp.transpose(out, (0, 3, 1, 2)).astype(jnp.float32)


# ------------------------------ pure-JAX reference ----------------------------

def _ref_bottleneck(x, params, *, stride, downsample):
    def conv(x, w, s, pad):
        return jax.lax.conv_general_dilated(
            x, w, (s, s), pad, dimension_numbers=("NCHW", "OIHW", "NCHW"))

    def bn(x, p):
        g, b, m, v = p
        sc = g / jnp.sqrt(v + BN_EPS)
        return x * sc[None, :, None, None] + (b - m * sc)[None, :, None, None]

    out = jax.nn.relu(bn(conv(x, params["w1"], 1, "VALID"), params["bn1"]))
    out = jax.nn.relu(bn(conv(out, params["w2"], stride, ((1, 1), (1, 1))), params["bn2"]))
    out = bn(conv(out, params["w3"], 1, "VALID"), params["bn3"])
    if downsample is None:
        res = x
    else:
        res = bn(conv(x, downsample["w"], stride, "VALID"), downsample["bn"])
    return jax.nn.relu(out + res)


# ------------------------------ param init ------------------------------------

def make_params(key, inplanes, planes):
    ks = jax.random.split(key, 12)

    def bn_params(k, c):
        k1, k2, k3, k4 = jax.random.split(k, 4)
        gamma = 1.0 + 0.1 * jax.random.normal(k1, (c,), jnp.float32)
        beta = 0.1 * jax.random.normal(k2, (c,), jnp.float32)
        mean = 0.1 * jax.random.normal(k3, (c,), jnp.float32)
        var = jnp.abs(jax.random.normal(k4, (c,), jnp.float32)) + 0.5
        return (gamma, beta, mean, var)

    params = {
        "w1": 0.1 * jax.random.normal(ks[0], (planes, inplanes, 1, 1), jnp.float32),
        "bn1": bn_params(ks[1], planes),
        "w2": 0.1 * jax.random.normal(ks[2], (planes, planes, 3, 3), jnp.float32),
        "bn2": bn_params(ks[3], planes),
        "w3": 0.1 * jax.random.normal(ks[4], (planes * 4, planes, 1, 1), jnp.float32),
        "bn3": bn_params(ks[5], planes * 4),
    }
    return params, ks[6:]


# ------------------------------ main -------------------------------------------

if __name__ == "__main__":
    key = jax.random.PRNGKey(0)
    # bf16 MXU inputs -> relaxed (bf16-appropriate) tolerances vs the f32 reference.
    ATOL = RTOL = 5e-2

    # Case 1: identity residual (inplanes == 4*planes, stride=1, downsample=None)
    N, inplanes, planes, H, W = 2, 16, 4, 8, 8
    params1, rest = make_params(key, inplanes, planes)
    x1 = jax.random.normal(rest[0], (N, inplanes, H, W), jnp.float32)
    out1 = jax.block_until_ready(bottleneck_forward(x1, params1, stride=1))
    ref1 = _ref_bottleneck(x1, params1, stride=1, downsample=None)
    ok1 = bool(jnp.allclose(out1, ref1, atol=ATOL, rtol=RTOL))

    # Case 2: strided block with a downsample branch (1x1 conv stride 2 + bn)
    inplanes2 = 8
    params2, rest2 = make_params(rest[1], inplanes2, planes)
    kd1, kd2, kx = jax.random.split(rest2[0], 3)
    downsample = {
        "w": 0.1 * jax.random.normal(kd1, (planes * 4, inplanes2, 1, 1), jnp.float32),
        "bn": (
            1.0 + 0.1 * jax.random.normal(kd2, (planes * 4,), jnp.float32),
            jnp.zeros((planes * 4,), jnp.float32),
            jnp.zeros((planes * 4,), jnp.float32),
            jnp.ones((planes * 4,), jnp.float32),
        ),
    }
    x2 = jax.random.normal(kx, (N, inplanes2, H, W), jnp.float32)
    out2 = jax.block_until_ready(
        bottleneck_forward(x2, params2, downsample, stride=2))
    ref2 = _ref_bottleneck(x2, params2, stride=2, downsample=downsample)
    ok2 = bool(jnp.allclose(out2, ref2, atol=ATOL, rtol=RTOL))

    if not (ok1 and ok2):
        d1 = float(jnp.max(jnp.abs(out1 - ref1)))
        d2 = float(jnp.max(jnp.abs(out2 - ref2)))
        raise AssertionError(
            f"Pallas output mismatch vs reference: case1={ok1} (max|d|={d1}), "
            f"case2={ok2} (max|d|={d2})")
    print("KERNEL_OK")
</pallas_src>

<mosaic_0001>
module attributes {stable_mosaic.version = 11 : i64} {
  func.func @_mm_bias_relu_kernel(%arg0: i32, %arg1: memref<128x128xbf16, #tpu.memory_space<vmem>>, %arg2: memref<128x128xbf16, #tpu.memory_space<vmem>>, %arg3: memref<1x128xf32, #tpu.memory_space<vmem>>, %arg4: memref<128x128xbf16, #tpu.memory_space<vmem>>) attributes {dimension_semantics = [#tpu.dimension_semantics<parallel>], iteration_bounds = array<i64: 1>, scalar_prefetch = 0 : i64, scratch_operands = 0 : i64, tpu.core_type = #tpu.core_type<tc>, window_params = [{transform_indices = @transform_0, window_bounds = array<i64: 128, 128>}, {pipeline_mode = #tpu.pipeline_mode<synchronous>, transform_indices = @transform_1, window_bounds = array<i64: 128, 128>}, {pipeline_mode = #tpu.pipeline_mode<synchronous>, transform_indices = @transform_2, window_bounds = array<i64: 1, 128>}, {transform_indices = @transform_3, window_bounds = array<i64: 128, 128>}]} {
    %c0 = arith.constant 0 : index
    %c0_0 = arith.constant 0 : index
    %0 = vector.load %arg1[%c0, %c0_0] : memref<128x128xbf16, #tpu.memory_space<vmem>>, vector<128x128xbf16>
    %c0_1 = arith.constant 0 : index
    %c0_2 = arith.constant 0 : index
    %1 = vector.load %arg2[%c0_1, %c0_2] : memref<128x128xbf16, #tpu.memory_space<vmem>>, vector<128x128xbf16>
    %cst = arith.constant dense<0.000000e+00> : vector<128x128xf32>
    %2 = tpu.matmul %0, %1, %cst {dimension_numbers = #tpu.dot_dimension_numbers<[1], [0], [0], [1], [0, 0, 1, 1], [], []>} : vector<128x128xbf16>, vector<128x128xbf16>, vector<128x128xf32> -> vector<128x128xf32>
    %c0_3 = arith.constant 0 : index
    %c0_4 = arith.constant 0 : index
    %3 = vector.load %arg3[%c0_3, %c0_4] : memref<1x128xf32, #tpu.memory_space<vmem>>, vector<1x128xf32>
    %4 = vector.broadcast %3 : vector<1x128xf32> to vector<128x128xf32>
    %5 = arith.addf %2, %4 : vector<128x128xf32>
    %cst_5 = arith.constant 0.000000e+00 : f32
    %6 = vector.broadcast %cst_5 : f32 to vector<128x128xf32>
    %7 = arith.maximumf %5, %6 : vector<128x128xf32>
    %8 = arith.truncf %7 : vector<128x128xf32> to vector<128x128xbf16>
    %c0_6 = arith.constant 0 : index
    %c0_7 = arith.constant 0 : index
    %9 = vector.load %arg4[%c0_6, %c0_7] : memref<128x128xbf16, #tpu.memory_space<vmem>>, vector<128x128xbf16>
    tpu.vector_store %arg4[%c0_6, %c0_7], %8 {strides = array<i32>} : memref<128x128xbf16, #tpu.memory_space<vmem>>, vector<128x128xbf16>,
    return
  }
  func.func @transform_0(%arg0: i32) -> (i32, i32) {
    %c0_i32 = arith.constant 0 : i32
    %c0_i32_0 = arith.constant 0 : i32
    return %arg0, %c0_i32 : i32, i32
  }
  func.func @transform_1(%arg0: i32) -> (i32, i32) {
    %c0_i32 = arith.constant 0 : i32
    %c0_i32_0 = arith.constant 0 : i32
    %c0_i32_1 = arith.constant 0 : i32
    return %c0_i32, %c0_i32_0 : i32, i32
  }
  func.func @transform_2(%arg0: i32) -> (i32, i32) {
    %c0_i32 = arith.constant 0 : i32
    %c0_i32_0 = arith.constant 0 : i32
    %c0_i32_1 = arith.constant 0 : i32
    return %c0_i32, %c0_i32_0 : i32, i32
  }
  func.func @transform_3(%arg0: i32) -> (i32, i32) {
    %c0_i32 = arith.constant 0 : i32
    %c0_i32_0 = arith.constant 0 : i32
    return %arg0, %c0_i32 : i32, i32
  }
}

module attributes {stable_mosaic.version = 11 : i64} {
  func.func @_fused_id_kernel(%arg0: i32, %arg1: i32, %arg2: memref<1x1x1x10x10x128xbf16, #tpu.memory_space<vmem>>, %arg3: memref<9x128x128xbf16, #tpu.memory_space<vmem>>, %arg4: memref<1x128xf32, #tpu.memory_space<vmem>>, %arg5: memref<128x128xbf16, #tpu.memory_space<vmem>>, %arg6: memref<1x128xf32, #tpu.memory_space<vmem>>, %arg7: memref<1x64x128xbf16, #tpu.memory_space<vmem>>, %arg8: memref<1x64x128xbf16, #tpu.memory_space<vmem>>, %arg9: memref<64x128xf32, #tpu.memory_space<vmem>>) attributes {dimension_semantics = [#tpu.dimension_semantics<parallel>, #tpu.dimension_semantics<parallel>], iteration_bounds = array<i64: 2, 1>, scalar_prefetch = 0 : i64, scratch_operands = 1 : i64, tpu.core_type = #tpu.core_type<tc>, window_params = [{transform_indices = @transform_0, window_bounds = array<i64: 1, 1, 1, 10, 10, 128>}, {pipeline_mode = #tpu.pipeline_mode<synchronous>, transform_indices = @transform_1, window_bounds = array<i64: 9, 128, 128>}, {pipeline_mode = #tpu.pipeline_mode<synchronous>, transform_indices = @transform_2, window_bounds = array<i64: 1, 128>}, {pipeline_mode = #tpu.pipeline_mode<synchronous>, transform_indices = @transform_3, window_bounds = array<i64: 128, 128>}, {pipeline_mode = #tpu.pipeline_mode<synchronous>, transform_indices = @transform_4, window_bounds = array<i64: 1, 128>}, {transform_indices = @transform_5, window_bounds = array<i64: 1, 64, 128>}, {transform_indices = @transform_6, window_bounds = array<i64: 1, 64, 128>}]} {
    %c0 = arith.constant 0 : index
    %c0_0 = arith.constant 0 : index
    %c0_1 = arith.constant 0 : index
    %c0_2 = arith.constant 0 : index
    %c0_3 = arith.constant 0 : index
    %c0_4 = arith.constant 0 : index
    %0 = vector.load %arg2[%c0, %c0_0, %c0_1, %c0_2, %c0_3, %c0_4] : memref<1x1x1x10x10x128xbf16, #tpu.memory_space<vmem>>, vector<1x1x1x8x8x128xbf16>
    %1 = vector.shape_cast %0 : vector<1x1x1x8x8x128xbf16> to vector<8x8x128xbf16>
    %2 = vector.shape_cast %1 : vector<8x8x128xbf16> to vector<64x128xbf16>
    %c0_5 = arith.constant 0 : index
    %c0_6 = arith.constant 0 : index
    %c0_7 = arith.constant 0 : index
    %3 = vector.load %arg3[%c0_5, %c0_6, %c0_7] : memref<9x128x128xbf16, #tpu.memory_space<vmem>>, vector<1x128x128xbf16>
    %4 = vector.shape_cast %3 : vector<1x128x128xbf16> to vector<128x128xbf16>
    %cst = arith.constant dense<0.000000e+00> : vector<64x128xf32>
    %5 = tpu.matmul %2, %4, %cst {dimension_numbers = #tpu.dot_dimension_numbers<[1], [0], [0], [1], [0, 0, 1, 1], [], []>} : vector<64x128xbf16>, vector<128x128xbf16>, vector<64x128xf32> -> vector<64x128xf32>
    %c0_8 = arith.constant 0 : index
    %c0_9 = arith.constant 0 : index
    %6 = vector.load %arg9[%c0_8, %c0_9] : memref<64x128xf32, #tpu.memory_space<vmem>>, vector<64x128xf32>
    tpu.vector_store %arg9[%c0_8, %c0_9], %5 {strides = array<i32>} : memref<64x128xf32, #tpu.memory_space<vmem>>, vector<64x128xf32>,
    %c0_10 = arith.constant 0 : index
    %c0_11 = arith.constant 0 : index
    %c0_12 = arith.constant 0 : index
    %c0_13 = arith.constant 0 : index
    %c1 = arith.constant 1 : index
    %c0_14 = arith.constant 0 : index
    %7 = vector.load %arg2[%c0_10, %c0_11, %c0_12, %c0_13, %c1, %c0_14] : memref<1x1x1x10x10x128xbf16, #tpu.memory_space<vmem>>, vector<1x1x1x8x8x128xbf16>
    %8 = vector.shape_cast %7 : vector<1x1x1x8x8x128xbf16> to vector<8x8x128xbf16>
    %9 = vector.shape_cast %8 : vector<8x8x128xbf16> to vector<64x128xbf16>
    %c1_15 = arith.constant 1 : index
    %c0_16 = arith.constant 0 : index
    %c0_17 = arith.constant 0 : index
    %10 = vector.load %arg3[%c1_15, %c0_16, %c0_17] : memref<9x128x128xbf16, #tpu.memory_space<vmem>>, vector<1x128x128xbf16>
    %11 = vector.shape_cast %10 : vector<1x128x128xbf16> to vector<128x128xbf16>
    %cst_18 = arith.constant dense<0.000000e+00> : vector<64x128xf32>
    %12 = tpu.matmul %9, %11, %cst_18 {dimension_numbers = #tpu.dot_dimension_numbers<[1], [0], [0], [1], [0, 0, 1, 1], [], []>} : vector<64x128xbf16>, vector<128x128xbf16>, vector<64x128xf32> -> vector<64x128xf32>
    %c0_19 = arith.constant 0 : index
    %c0_20 = arith.constant 0 : index
    %13 = vector.load %arg9[%c0_19, %c0_20] : memref<64x128xf32, #tpu.memory_space<vmem>>, vector<64x128xf32>
    %14 = arith.addf %13, %12 : vector<64x128xf32>
    %c0_21 = arith.constant 0 : index
    %c0_22 = arith.constant 0 : index
    %15 = vector.load %arg9[%c0_21, %c0_22] : memref<64x128xf32, #tpu.memory_space<vmem>>, vector<64x128xf32>
    tpu.vector_store %arg9[%c0_21, %c0_22], %14 {strides = array<i32>} : memref<64x128xf32, #tpu.memory_space<vmem>>, vector<64x128xf32>,
    %c0_23 = arith.constant 0 : index
    %c0_24 = arith.constant 0 : index
    %c0_25 = arith.constant 0 : index
    %c0_26 = arith.constant 0 : index
    %c2 = arith.constant 2 : index
    %c0_27 = arith.constant 0 : index
    %16 = vector.load %arg2[%c0_23, %c0_24, %c0_25, %c0_26, %c2, %c0_27] : memref<1x1x1x10x10x128xbf16, #tpu.memory_space<vmem>>, vector<1x1x1x8x8x128xbf16>
    %17 = vector.shape_cast %16 : vector<1x1x1x8x8x128xbf16> to vector<8x8x128xbf16>
    %18 = vector.shape_cast %17 : vector<8x8x128xbf16> to vector<64x128xbf16>
    %c2_28 = arith.constant 2 : index
    %c0_29 = arith.constant 0 : index
    %c0_30 = arith.constant 0 : index
    %19 = vector.load %arg3[%c2_28, %c0_29, %c0_30] : memref<9x128x128xbf16, #tpu.memory_space<vmem>>, vector<1x128x128xbf16>
    %20 = vector.shape_cast %19 : vector<1x128x128xbf16> to vector<128x128xbf16>
    %cst_31 = arith.constant dense<0.000000e+00> : vector<64x128xf32>
    %21 = tpu.matmul %18, %20, %cst_31 {dimension_numbers = #tpu.dot_dimension_numbers<[1], [0], [0], [1], [0, 0, 1, 1], [], []>} : vector<64x128xbf16>, vector<128x128xbf16>, vector<64x128xf32> -> vector<64x128xf32>
    %c0_32 = arith.constant 0 : index
    %c0_33 = arith.constant 0 : index
    %22 = vector.load %arg9[%c0_32, %c0_33] : memref<64x128xf32, #tpu.memory_space<vmem>>, vector<64x128xf32>
    %23 = arith.addf %22, %21 : vector<64x128xf32>
    %c0_34 = arith.constant 0 : index
    %c0_35 = arith.constant 0 : index
    %24 = vector.load %arg9[%c0_34, %c0_35] : memref<64x128xf32, #tpu.memory_space<vmem>>, vector<64x128xf32>
    tpu.vector_store %arg9[%c0_34, %c0_35], %23 {strides = array<i32>} : memref<64x128xf32, #tpu.memory_space<vmem>>, vector<64x128xf32>,
    %c0_36 = arith.constant 0 : index
    %c0_37 = arith.constant 0 : index
    %c0_38 = arith.constant 0 : index
    %c1_39 = arith.constant 1 : index
    %c0_40 = arith.constant 0 : index
    %c0_41 = arith.constant 0 : index
    %25 = vector.load %arg2[%c0_36, %c0_37, %c0_38, %c1_39, %c0_40, %c0_41] : memref<1x1x1x10x10x128xbf16, #tpu.memory_space<vmem>>, vector<1x1x1x8x8x128xbf16>
    %26 = vector.shape_cast %25 : vector<1x1x1x8x8x128xbf16> to vector<8x8x128xbf16>
    %27 = vector.shape_cast %26 : vector<8x8x128xbf16> to vector<64x128xbf16>
    %c3 = arith.constant 3 : index
    %c0_42 = arith.constant 0 : index
    %c0_43 = arith.constant 0 : index
    %28 = vector.load %arg3[%c3, %c0_42, %c0_43] : memref<9x128x128xbf16, #tpu.memory_space<vmem>>, vector<1x128x128xbf16>
    %29 = vector.shape_cast %28 : vector<1x128x128xbf16> to vector<128x128xbf16>
    %cst_44 = arith.constant dense<0.000000e+00> : vector<64x128xf32>
    %30 = tpu.matmul %27, %29, %cst_44 {dimension_numbers = #tpu.dot_dimension_numbers<[1], [0], [0], [1], [0, 0, 1, 1], [], []>} : vector<64x128xbf16>, vector<128x128xbf16>, vector<64x128xf32> -> vector<64x128xf32>
    %c0_45 = arith.constant 0 : index
    %c0_46 = arith.constant 0 : index
    %31 = vector.load %arg9[%c0_45, %c0_46] : memref<64x128xf32, #tpu.memory_space<vmem>>, vector<64x128xf32>
    %32 = arith.addf %31, %30 : vector<64x128xf32>
    %c0_47 = arith.constant 0 : index
    %c0_48 = arith.constant 0 : index
    %33 = vector.load %arg9[%c0_47, %c0_48] : memref<64x128xf32, #tpu.memory_space<vmem>>, vector<64x128xf32>
    tpu.vector_store %arg9[%c0_47, %c0_48], %32 {strides = array<i32>} : memref<64x128xf32, #tpu.memory_space<vmem>>, vector<64x128xf32>,
    %c0_49 = arith.constant 0 : index
    %c0_50 = arith.constant 0 : index
    %c0_51 = arith.constant 0 : index
    %c1_52 = arith.constant 1 : index
    %c1_53 = arith.constant 1 : index
    %c0_54 = arith.constant 0 : index
    %34 = vector.load %arg2[%c0_49, %c0_50, %c0_51, %c1_52, %c1_53, %c0_54] : memref<1x1x1x10x10x128xbf16, #tpu.memory_space<vmem>>, vector<1x1x1x8x8x128xbf16>
    %35 = vector.shape_cast %34 : vector<1x1x1x8x8x128xbf16> to vector<8x8x128xbf16>
    %36 = vector.shape_cast %35 : vector<8x8x128xbf16> to vector<64x128xbf16>
    %c4 = arith.constant 4 : index
    %c0_55 = arith.constant 0 : index
    %c0_56 = arith.constant 0 : index
    %37 = vector.load %arg3[%c4, %c0_55, %c0_56] : memref<9x128x128xbf16, #tpu.memory_space<vmem>>, vector<1x128x128xbf16>
    %38 = vector.shape_cast %37 : vector<1x128x128xbf16> to vector<128x128xbf16>
    %cst_57 = arith.constant dense<0.000000e+00> : vector<64x128xf32>
    %39 = tpu.matmul %36, %38, %cst_57 {dimension_numbers = #tpu.dot_dimension_numbers<[1], [0], [0], [1], [0, 0, 1, 1], [], []>} : vector<64x128xbf16>, vector<128x128xbf16>, vector<64x128xf32> -> vector<64x128xf32>
    %c0_58 = arith.constant 0 : index
    %c0_59 = arith.constant 0 : index
    %40 = vector.load %arg9[%c0_58, %c0_59] : memref<64x128xf32, #tpu.memory_space<vmem>>, vector<64x128xf32>
    %41 = arith.addf %40, %39 : vector<64x128xf32>
    %c0_60 = arith.constant 0 : index
    %c0_61 = arith.constant 0 : index
    %42 = vector.load %arg9[%c0_60, %c0_61] : memref<64x128xf32, #tpu.memory_space<vmem>>, vector<64x128xf32>
    tpu.vector_store %arg9[%c0_60, %c0_61], %41 {strides = array<i32>} : memref<64x128xf32, #tpu.memory_space<vmem>>, vector<64x128xf32>,
    %c0_62 = arith.constant 0 : index
    %c0_63 = arith.constant 0 : index
    %c0_64 = arith.constant 0 : index
    %c1_65 = arith.constant 1 : index
    %c2_66 = arith.constant 2 : index
    %c0_67 = arith.constant 0 : index
    %43 = vector.load %arg2[%c0_62, %c0_63, %c0_64, %c1_65, %c2_66, %c0_67] : memref<1x1x1x10x10x128xbf16, #tpu.memory_space<vmem>>, vector<1x1x1x8x8x128xbf16>
    %44 = vector.shape_cast %43 : vector<1x1x1x8x8x128xbf16> to vector<8x8x128xbf16>
    %45 = vector.shape_cast %44 : vector<8x8x128xbf16> to vector<64x128xbf16>
    %c5 = arith.constant 5 : index
    %c0_68 = arith.constant 0 : index
    %c0_69 = arith.constant 0 : index
    %46 = vector.load %arg3[%c5, %c0_68, %c0_69] : memref<9x128x128xbf16, #tpu.memory_space<vmem>>, vector<1x128x128xbf16>
    %47 = vector.shape_cast %46 : vector<1x128x128xbf16> to vector<128x128xbf16>
    %cst_70 = arith.constant dense<0.000000e+00> : vector<64x128xf32>
    %48 = tpu.matmul %45, %47, %cst_70 {dimension_numbers = #tpu.dot_dimension_numbers<[1], [0], [0], [1], [0, 0, 1, 1], [], []>} : vector<64x128xbf16>, vector<128x128xbf16>, vector<64x128xf32> -> vector<64x128xf32>
    %c0_71 = arith.constant 0 : index
    %c0_72 = arith.constant 0 : index
    %49 = vector.load %arg9[%c0_71, %c0_72] : memref<64x128xf32, #tpu.memory_space<vmem>>, vector<64x128xf32>
    %50 = arith.addf %49, %48 : vector<64x128xf32>
    %c0_73 = arith.constant 0 : index
    %c0_74 = arith.constant 0 : index
    %51 = vector.load %arg9[%c0_73, %c0_74] : memref<64x128xf32, #tpu.memory_space<vmem>>, vector<64x128xf32>
    tpu.vector_store %arg9[%c0_73, %c0_74], %50 {strides = array<i32>} : memref<64x128xf32, #tpu.memory_space<vmem>>, vector<64x128xf32>,
    %c0_75 = arith.constant 0 : index
    %c0_76 = arith.constant 0 : index
    %c0_77 = arith.constant 0 : index
    %c2_78 = arith.constant 2 : index
    %c0_79 = arith.constant 0 : index
    %c0_80 = arith.constant 0 : index
    %52 = vector.load %arg2[%c0_75, %c0_76, %c0_77, %c2_78, %c0_79, %c0_80] : memref<1x1x1x10x10x128xbf16, #tpu.memory_space<vmem>>, vector<1x1x1x8x8x128xbf16>
    %53 = vector.shape_cast %52 : vector<1x1x1x8x8x128xbf16> to vector<8x8x128xbf16>
    %54 = vector.shape_cast %53 : vector<8x8x128xbf16> to vector<64x128xbf16>
    %c6 = arith.constant 6 : index
    %c0_81 = arith.constant 0 : index
    %c0_82 = arith.constant 0 : index
    %55 = vector.load %arg3[%c6, %c0_81, %c0_82] : memref<9x128x128xbf16, #tpu.memory_space<vmem>>, vector<1x128x128xbf16>
    %56 = vector.shape_cast %55 : vector<1x128x128xbf16> to vector<128x128xbf16>
    %cst_83 = arith.constant dense<0.000000e+00> : vector<64x128xf32>
    %57 = tpu.matmul %54, %56, %cst_83 {dimension_numbers = #tpu.dot_dimension_numbers<[1], [0], [0], [1], [0, 0, 1, 1], [], []>} : vector<64x128xbf16>, vector<128x128xbf16>, vector<64x128xf32> -> vector<64x128xf32>
    %c0_84 = arith.constant 0 : index
    %c0_85 = arith.constant 0 : index
    %58 = vector.load %arg9[%c0_84, %c0_85] : memref<64x128xf32, #tpu.memory_space<vmem>>, vector<64x128xf32>
    %59 = arith.addf %58, %57 : vector<64x128xf32>
    %c0_86 = arith.constant 0 : index
    %c0_87 = arith.constant 0 : index
    %60 = vector.load %arg9[%c0_86, %c0_87] : memref<64x128xf32, #tpu.memory_space<vmem>>, vector<64x128xf32>
    tpu.vector_store %arg9[%c0_86, %c0_87], %59 {strides = array<i32>} : memref<64x128xf32, #tpu.memory_space<vmem>>, vector<64x128xf32>,
    %c0_88 = arith.constant 0 : index
    %c0_89 = arith.constant 0 : index
    %c0_90 = arith.constant 0 : index
    %c2_91 = arith.constant 2 : index
    %c1_92 = arith.constant 1 : index
    %c0_93 = arith.constant 0 : index
    %61 = vector.load %arg2[%c0_88, %c0_89, %c0_90, %c2_91, %c1_92, %c0_93] : memref<1x1x1x10x10x128xbf16, #tpu.memory_space<vmem>>, vector<1x1x1x8x8x128xbf16>
    %62 = vector.shape_cast %61 : vector<1x1x1x8x8x128xbf16> to vector<8x8x128xbf16>
    %63 = vector.shape_cast %62 : vector<8x8x128xbf16> to vector<64x128xbf16>
    %c7 = arith.constant 7 : index
    %c0_94 = arith.constant 0 : index
    %c0_95 = arith.constant 0 : index
    %64 = vector.load %arg3[%c7, %c0_94, %c0_95] : memref<9x128x128xbf16, #tpu.memory_space<vmem>>, vector<1x128x128xbf16>
    %65 = vector.shape_cast %64 : vector<1x128x128xbf16> to vector<128x128xbf16>
    %cst_96 = arith.constant dense<0.000000e+00> : vector<64x128xf32>
    %66 = tpu.matmul %63, %65, %cst_96 {dimension_numbers = #tpu.dot_dimension_numbers<[1], [0], [0], [1], [0, 0, 1, 1], [], []>} : vector<64x128xbf16>, vector<128x128xbf16>, vector<64x128xf32> -> vector<64x128xf32>
    %c0_97 = arith.constant 0 : index
    %c0_98 = arith.constant 0 : index
    %67 = vector.load %arg9[%c0_97, %c0_98] : memref<64x128xf32, #tpu.memory_space<vmem>>, vector<64x128xf32>
    %68 = arith.addf %67, %66 : vector<64x128xf32>
    %c0_99 = arith.constant 0 : index
    %c0_100 = arith.constant 0 : index
    %69 = vector.load %arg9[%c0_99, %c0_100] : memref<64x128xf32, #tpu.memory_space<vmem>>, vector<64x128xf32>
    tpu.vector_store %arg9[%c0_99, %c0_100], %68 {strides = array<i32>} : memref<64x128xf32, #tpu.memory_space<vmem>>, vector<64x128xf32>,
    %c0_101 = arith.constant 0 : index
    %c0_102 = arith.constant 0 : index
    %c0_103 = arith.constant 0 : index
    %c2_104 = arith.constant 2 : index
    %c2_105 = arith.constant 2 : index
    %c0_106 = arith.constant 0 : index
    %70 = vector.load %arg2[%c0_101, %c0_102, %c0_103, %c2_104, %c2_105, %c0_106] : memref<1x1x1x10x10x128xbf16, #tpu.memory_space<vmem>>, vector<1x1x1x8x8x128xbf16>
    %71 = vector.shape_cast %70 : vector<1x1x1x8x8x128xbf16> to vector<8x8x128xbf16>
    %72 = vector.shape_cast %71 : vector<8x8x128xbf16> to vector<64x128xbf16>
    %c8 = arith.constant 8 : index
    %c0_107 = arith.constant 0 : index
    %c0_108 = arith.constant 0 : index
    %73 = vector.load %arg3[%c8, %c0_107, %c0_108] : memref<9x128x128xbf16, #tpu.memory_space<vmem>>, vector<1x128x128xbf16>
    %74 = vector.shape_cast %73 : vector<1x128x128xbf16> to vector<128x128xbf16>
    %cst_109 = arith.constant dense<0.000000e+00> : vector<64x128xf32>
    %75 = tpu.matmul %72, %74, %cst_109 {dimension_numbers = #tpu.dot_dimension_numbers<[1], [0], [0], [1], [0, 0, 1, 1], [], []>} : vector<64x128xbf16>, vector<128x128xbf16>, vector<64x128xf32> -> vector<64x128xf32>
    %c0_110 = arith.constant 0 : index
    %c0_111 = arith.constant 0 : index
    %76 = vector.load %arg9[%c0_110, %c0_111] : memref<64x128xf32, #tpu.memory_space<vmem>>, vector<64x128xf32>
    %77 = arith.addf %76, %75 : vector<64x128xf32>
    %c0_112 = arith.constant 0 : index
    %c0_113 = arith.constant 0 : index
    %78 = vector.load %arg9[%c0_112, %c0_113] : memref<64x128xf32, #tpu.memory_space<vmem>>, vector<64x128xf32>
    tpu.vector_store %arg9[%c0_112, %c0_113], %77 {strides = array<i32>} : memref<64x128xf32, #tpu.memory_space<vmem>>, vector<64x128xf32>,
    %c0_114 = arith.constant 0 : index
    %c0_115 = arith.constant 0 : index
    %79 = vector.load %arg9[%c0_114, %c0_115] : memref<64x128xf32, #tpu.memory_space<vmem>>, vector<64x128xf32>
    %c0_116 = arith.constant 0 : index
    %c0_117 = arith.constant 0 : index
    %80 = vector.load %arg4[%c0_116, %c0_117] : memref<1x128xf32, #tpu.memory_space<vmem>>, vector<1x128xf32>
    %81 = vector.broadcast %80 : vector<1x128xf32> to vector<64x128xf32>
    %82 = arith.addf %79, %81 : vector<64x128xf32>
    %cst_118 = arith.constant 0.000000e+00 : f32
    %83 = vector.broadcast %cst_118 : f32 to vector<64x128xf32>
    %84 = arith.maximumf %82, %83 : vector<64x128xf32>
    %85 = arith.truncf %84 : vector<64x128xf32> to vector<64x128xbf16>
    %c0_119 = arith.constant 0 : index
    %c0_120 = arith.constant 0 : index
    %86 = vector.load %arg5[%c0_119, %c0_120] : memref<128x128xbf16, #tpu.memory_space<vmem>>, vector<128x128xbf16>
    %cst_121 = arith.constant dense<0.000000e+00> : vector<64x128xf32>
    %87 = tpu.matmul %85, %86, %cst_121 {dimension_numbers = #tpu.dot_dimension_numbers<[1], [0], [0], [1], [0, 0, 1, 1], [], []>} : vector<64x128xbf16>, vector<128x128xbf16>, vector<64x128xf32> -> vector<64x128xf32>
    %c0_122 = arith.constant 0 : index
    %c0_123 = arith.constant 0 : index
    %88 = vector.load %arg6[%c0_122, %c0_123] : memref<1x128xf32, #tpu.memory_space<vmem>>, vector<1x128xf32>
    %89 = vector.broadcast %88 : vector<1x128xf32> to vector<64x128xf32>
    %90 = arith.addf %87, %89 : vector<64x128xf32>
    %c0_124 = arith.constant 0 : index
    %c0_125 = arith.constant 0 : index
    %c0_126 = arith.constant 0 : index
    %91 = vector.load %arg7[%c0_124, %c0_125, %c0_126] : memref<1x64x128xbf16, #tpu.memory_space<vmem>>, vector<1x64x128xbf16>
    %92 = vector.shape_cast %91 : vector<1x64x128xbf16> to vector<64x128xbf16>
    %93 = arith.extf %92 : vector<64x128xbf16> to vector<64x128xf32>
    %94 = arith.addf %90, %93 : vector<64x128xf32>
    %cst_127 = arith.constant 0.000000e+00 : f32
    %95 = vector.broadcast %cst_127 : f32 to vector<64x128xf32>
    %96 = arith.maximumf %94, %95 : vector<64x128xf32>
    %97 = arith.truncf %96 : vector<64x128xf32> to vector<64x128xbf16>
    %c0_128 = arith.constant 0 : index
    %c0_129 = arith.constant 0 : index
    %c0_130 = arith.constant 0 : index
    %98 = vector.load %arg8[%c0_128, %c0_129, %c0_130] : memref<1x64x128xbf16, #tpu.memory_space<vmem>>, vector<1x64x128xbf16>
    %99 = vector.shape_cast %98 : vector<1x64x128xbf16> to vector<64x128xbf16>
    %100 = vector.shape_cast %97 : vector<64x128xbf16> to vector<1x64x128xbf16>
    tpu.vector_store %arg8[%c0_128, %c0_129, %c0_130], %100 {strides = array<i32>} : memref<1x64x128xbf16, #tpu.memory_space<vmem>>, vector<1x64x128xbf16>,
    return
  }
  func.func @transform_0(%arg0: i32, %arg1: i32) -> (i32, i32, i32, i32, i32, i32) {
    %c0_i32 = arith.constant 0 : i32
    %c0_i32_0 = arith.constant 0 : i32
    %c0_i32_1 = arith.constant 0 : i32
    %c0_i32_2 = arith.constant 0 : i32
    %c0_i32_3 = arith.constant 0 : i32
    return %arg0, %c0_i32, %arg1, %c0_i32_0, %c0_i32_1, %c0_i32_2 : i32, i32, i32, i32, i32, i32
  }
  func.func @transform_1(%arg0: i32, %arg1: i32) -> (i32, i32, i32) {
    %c0_i32 = arith.constant 0 : i32
    %c0_i32_0 = arith.constant 0 : i32
    %c0_i32_1 = arith.constant 0 : i32
    %c0_i32_2 = arith.constant 0 : i32
    return %c0_i32, %c0_i32_0, %c0_i32_1 : i32, i32, i32
  }
  func.func @transform_2(%arg0: i32, %arg1: i32) -> (i32, i32) {
    %c0_i32 = arith.constant 0 : i32
    %c0_i32_0 = arith.constant 0 : i32
    %c0_i32_1 = arith.constant 0 : i32
    return %c0_i32, %c0_i32_0 : i32, i32
  }
  func.func @transform_3(%arg0: i32, %arg1: i32) -> (i32, i32) {
    %c0_i32 = arith.constant 0 : i32
    %c0_i32_0 = arith.constant 0 : i32
    %c0_i32_1 = arith.constant 0 : i32
    return %c0_i32, %c0_i32_0 : i32, i32
  }
  func.func @transform_4(%arg0: i32, %arg1: i32) -> (i32, i32) {
    %c0_i32 = arith.constant 0 : i32
    %c0_i32_0 = arith.constant 0 : i32
    %c0_i32_1 = arith.constant 0 : i32
    return %c0_i32, %c0_i32_0 : i32, i32
  }
  func.func @transform_5(%arg0: i32, %arg1: i32) -> (i32, i32, i32) {
    %c0_i32 = arith.constant 0 : i32
    %c0_i32_0 = arith.constant 0 : i32
    return %arg0, %arg1, %c0_i32 : i32, i32, i32
  }
  func.func @transform_6(%arg0: i32, %arg1: i32) -> (i32, i32, i32) {
    %c0_i32 = arith.constant 0 : i32
    %c0_i32_0 = arith.constant 0 : i32
    return %arg0, %arg1, %c0_i32 : i32, i32, i32
  }
}

</mosaic_0001>

<bundles_post_ra>
// kernel: bottleneck_forward.2
= control target key start
LH: loop header
LB: loop body
LE: loop exit
PB: predicated region body
PF: predicated region fallthrough
CT: control target
= control target key end

     0   :  { %s618_s1 = inlined_call_operand.vmem [shape: bf16[128,128], index: 1, kind: input, shape index: {}]   ;;  %s619_s0 = inlined_call_operand.vmem [shape: bf16[128,128], index: 0, kind: input, shape index: {}]   ;;  %s620_s2 = inlined_call_operand.vmem [shape: f32[1,128], index: 2, kind: input, shape index: {}]   ;;  %s621_s3 = inlined_call_operand.vmem [shape: bf16[128,128], index: 3, kind: output, shape index: {}]  }
   0x1   :  { %v507_v0 = vld [vmem:[%s618_s1] sm:$0xff]   ;;  %v508_v1 = vld [vmem:[%s618_s1 + $0x8] sm:$0xff]   ;;  %v509_v2 = vld [vmem:[%s618_s1 + $0x10] sm:$0xff]  }
   0x2   :  { %459 = vmatprep.subr.bf16.mxu0 %v507_v0  ;;  %491 = vmatprep.subr.bf16.mxu1 %v507_v0  ;;  %v510_v3 = vld [vmem:[%s618_s1 + $0x18] sm:$0xff]   ;;  %v515_v4 = vld [vmem:[%s619_s0] sm:$0xff]   ;;  %v512_v7 = vld [vmem:[%s618_s1 + $0x28] sm:$0xff]  }
   0x3   :  { %460 = vmatpush3.bf16.msra.mxu0 %v507_v0  ;;  %499 = vmatpush3.bf16.msra.mxu1 %v507_v0  ;;  %v516_v5 = vld [vmem:[%s619_s0 + $0x20] sm:$0xff]   ;;  %v513_v8 = vld [vmem:[%s618_s1 + $0x30] sm:$0xff]   ;;  %v514_v9 = vld [vmem:[%s618_s1 + $0x38] sm:$0xff]  }
   0x4   :  { %461 = vmatprep.subr.bf16.mxu0 %v508_v1  ;;  %492 = vmatprep.subr.bf16.mxu1 %v508_v1  ;;  %v511_v6 = vld [vmem:[%s618_s1 + $0x20] sm:$0xff]   ;;  %v517_v10 = vld [vmem:[%s619_s0 + $0x8] sm:$0xff]   ;;  %v519_v12 = vld [vmem:[%s619_s0 + $0x10] sm:$0xff]  }
   0x5   :  { %475 = vmatprep.mubr.bf16.mxu0 %v515_v4  ;;  %483 = vmatprep.mubr.bf16.mxu1 %v516_v5  ;;  %v518_v11 = vld [vmem:[%s619_s0 + $0x28] sm:$0xff]   ;;  %v520_v13 = vld [vmem:[%s619_s0 + $0x30] sm:$0xff]   ;;  %v521_v14 = vld [vmem:[%s619_s0 + $0x18] sm:$0xff]  }
   0x6   :  { %v522_v15 = vld [vmem:[%s619_s0 + $0x38] sm:$0xff]   ;;  %v347_v16 = vld [vmem:[%s620_s2] ss:$0 sm:$0xff] }
   0x7   :  { %462 = vmatpush3.bf16.msra.mxu0 %v508_v1  ;;  %500 = vmatpush3.bf16.msra.mxu1 %v508_v1 }
   0x8   :  { %463 = vmatprep.subr.bf16.mxu0 %v509_v2  ;;  %493 = vmatprep.subr.bf16.mxu1 %v509_v2 }
   0xb   :  { %464 = vmatpush3.bf16.msra.mxu0 %v509_v2  ;;  %501 = vmatpush3.bf16.msra.mxu1 %v509_v2 }
   0xc   :  { %465 = vmatprep.subr.bf16.mxu0 %v510_v3  ;;  %494 = vmatprep.subr.bf16.mxu1 %v510_v3 }
   0xf   :  { %466 = vmatpush3.bf16.msra.mxu0 %v510_v3  ;;  %502 = vmatpush3.bf16.msra.mxu1 %v510_v3 }
  0x10   :  { %467 = vmatprep.subr.bf16.mxu0 %v511_v6  ;;  %495 = vmatprep.subr.bf16.mxu1 %v511_v6 }
  0x13   :  { %468 = vmatpush3.bf16.msra.mxu0 %v511_v6  ;;  %503 = vmatpush3.bf16.msra.mxu1 %v511_v6 }
  0x14   :  { %469 = vmatprep.subr.bf16.mxu0 %v512_v7  ;;  %496 = vmatprep.subr.bf16.mxu1 %v512_v7 }
  0x17   :  { %470 = vmatpush3.bf16.msra.mxu0 %v512_v7  ;;  %504 = vmatpush3.bf16.msra.mxu1 %v512_v7 }
  0x18   :  { %471 = vmatprep.subr.bf16.mxu0 %v513_v8  ;;  %497 = vmatprep.subr.bf16.mxu1 %v513_v8 }
  0x1b   :  { %472 = vmatpush3.bf16.msra.mxu0 %v513_v8  ;;  %505 = vmatpush3.bf16.msra.mxu1 %v513_v8 }
  0x1c   :  { %473 = vmatprep.subr.bf16.mxu0 %v514_v9  ;;  %498 = vmatprep.subr.bf16.mxu1 %v514_v9 }
  0x1f   :  { %474 = vmatpush3.bf16.msra.mxu0 %v514_v9  ;;  %506 = vmatpush3.bf16.msra.mxu1 %v514_v9 }
  0x22   :  { %476 = vmatmul.mubr.bf16.vlgmr.msra.gmra.mrb[0].mxu0 %v517_v10  ;;  %484 = vmatmul.mubr.bf16.vlgmr.msra.gmra.mrb[0].mxu1 %v518_v11 }
  0x23   :  { %479 = vmatprep.mubr.bf16.mxu0 %v519_v12  ;;  %487 = vmatprep.mubr.bf16.mxu1 %v520_v13 }
  0x2a   :  { %480 = vmatmul.mubr.bf16.gmra.mrb[4].mxu0 %v521_v14  ;;  %488 = vmatmul.mubr.bf16.gmra.mrb[4].mxu1 %v522_v15 }
  0xf5   :  { %v477_v17 = vpop.f32.mrb[0].mxu0  ;;  %v485_v18 = vpop.f32.mrb[0].mxu1 }
  0xf6   :  { %v193_v19 = vadd.f32 %v477_v17, %v347_v16  ;;  %v225_v20 = vadd.f32 %v485_v18, %v347_v16  ;;  %v184_v21 = vpop.f32.mrb[1].mxu0  ;;  %v216_v22 = vpop.f32.mrb[1].mxu1 }
  0xf7   :  { %v185_v23 = vadd.f32 %v347_v16, %v184_v21  ;;  %v217_v24 = vadd.f32 %v347_v16, %v216_v22  ;;  %v478_v25 = vpop.f32.mrb[2].mxu0  ;;  %v486_v26 = vpop.f32.mrb[2].mxu1 }
  0xf8   :  { %v196_v27 = vadd.f32 %v478_v25, %v347_v16  ;;  %v228_v28 = vadd.f32 %v486_v26, %v347_v16  ;;  %v187_v29 = vpop.f32.mrb[3].mxu0  ;;  %v219_v30 = vpop.f32.mrb[3].mxu1  ;;  %v249_v33 = vmax.f32 %v193_v19, 0.0  ;;  %v257_v34 = vmax.f32 %v225_v20, 0.0 }
  0xf9   :  { %v188_v31 = vadd.f32 %v347_v16, %v187_v29  ;;  %v220_v32 = vadd.f32 %v347_v16, %v219_v30  ;;  %v247_v37 = vmax.f32 %v185_v23, 0.0  ;;  %v255_v38 = vmax.f32 %v217_v24, 0.0 }
  0xfa   :  { %v250_v35 = vmax.f32 %v196_v27, 0.0  ;;  %v258_v36 = vmax.f32 %v228_v28, 0.0 }
  0xfb   :  { %v248_v39 = vmax.f32 %v188_v31, 0.0  ;;  %v256_v40 = vmax.f32 %v220_v32, 0.0 }
  0xfc   :  { %v404_v41 = vpack.c.bf16 %v250_v35, %v249_v33  ;;  %v424_v42 = vpack.c.bf16 %v258_v36, %v257_v34 }
  0xfd   :  { %v399_v43 = vpack.c.bf16 %v248_v39, %v247_v37  ;;  %v419_v44 = vpack.c.bf16 %v256_v40, %v255_v38  ;;  %v481_v45 = vpop.f32.mrb[4].mxu0  ;;  %v489_v46 = vpop.f32.mrb[4].mxu1 }
  0xfe   :  { %436 = vst [vmem:[%s621_s3 + $0x8] sm:$0xff] %v404_v41   ;;  %440 = vst [vmem:[%s621_s3 + $0x28] sm:$0xff] %v424_v42   ;;  %v209_v47 = vadd.f32 %v481_v45, %v347_v16  ;;  %v241_v48 = vadd.f32 %v489_v46, %v347_v16  ;;  %v200_v49 = vpop.f32.mrb[5].mxu0  ;;  %v232_v50 = vpop.f32.mrb[5].mxu1 }
  0xff   :  { %400 = vst [vmem:[%s621_s3] sm:$0xff] %v399_v43   ;;  %439 = vst [vmem:[%s621_s3 + $0x20] sm:$0xff] %v419_v44   ;;  %v201_v51 = vadd.f32 %v347_v16, %v200_v49  ;;  %v233_v52 = vadd.f32 %v347_v16, %v232_v50  ;;  %v482_v53 = vpop.f32.mrb[6].mxu0  ;;  %v490_v54 = vpop.f32.mrb[6].mxu1 }
 0x100   :  { %v212_v55 = vadd.f32 %v482_v53, %v347_v16  ;;  %v244_v56 = vadd.f32 %v490_v54, %v347_v16  ;;  %v203_v57 = vpop.f32.mrb[7].mxu0  ;;  %v235_v58 = vpop.f32.mrb[7].mxu1  ;;  %v253_v61 = vmax.f32 %v209_v47, 0.0  ;;  %v261_v62 = vmax.f32 %v241_v48, 0.0 }
 0x101   :  { %v204_v59 = vadd.f32 %v347_v16, %v203_v57  ;;  %v236_v60 = vadd.f32 %v347_v16, %v235_v58  ;;  %v251_v1 = vmax.f32 %v201_v51, 0.0  ;;  %v259_v2 = vmax.f32 %v233_v52, 0.0 }
 0x102   :  { %v254_v63 = vmax.f32 %v212_v55, 0.0  ;;  %v262_v0 = vmax.f32 %v244_v56, 0.0 }
 0x103   :  { %v252_v3 = vmax.f32 %v204_v59, 0.0  ;;  %v260_v4 = vmax.f32 %v236_v60, 0.0 }
 0x104   :  { %v414_v5 = vpack.c.bf16 %v254_v63, %v253_v61  ;;  %v434_v6 = vpack.c.bf16 %v262_v0, %v261_v62 }
 0x105   :  { %v409_v7 = vpack.c.bf16 %v252_v3, %v251_v1  ;;  %v429_v8 = vpack.c.bf16 %v260_v4, %v259_v2 }
 0x106   :  { %438 = vst [vmem:[%s621_s3 + $0x18] sm:$0xff] %v414_v5   ;;  %442 = vst [vmem:[%s621_s3 + $0x38] sm:$0xff] %v434_v6  }
 0x107   :  { %437 = vst [vmem:[%s621_s3 + $0x10] sm:$0xff] %v409_v7   ;;  %441 = vst [vmem:[%s621_s3 + $0x30] sm:$0xff] %v429_v8  }

// kernel: bottleneck_forward.3
= control target key start
LH: loop header
LB: loop body
LE: loop exit
PB: predicated region body
PF: predicated region fallthrough
CT: control target
= control target key end

     0   :  { %s3844_s21 = smov 0   ;;  %s3846_s22 = smov 0   ;;  %s4348_s0 = inlined_call_operand.vmem [shape: bf16[2,1,1,10,10,128], index: 0, kind: input, shape index: {}]   ;;  %s4349_s1 = inlined_call_operand.vmem [shape: bf16[9,128,128], index: 1, kind: input, shape index: {}]   ;;  %s4350_s2 = inlined_call_operand.vmem [shape: f32[1,128], index: 2, kind: input, shape index: {}]   ;;  %s4351_s3 = inlined_call_operand.vmem [shape: bf16[128,128], index: 3, kind: input, shape index: {}]   ;;  %s4352_s4 = inlined_call_operand.vmem [shape: f32[1,128], index: 4, kind: input, shape index: {}]   ;;  %s4353_s5 = inlined_call_operand.vmem [shape: bf16[2,64,128], index: 5, kind: input, shape index: {}]   ;;  %s4354_s6 = inlined_call_operand.vmem [shape: bf16[2,64,128], index: 6, kind: output, shape index: {}]  }
   0x1   :  { %s3848_s23 = smov 0  }
   0x2 LB: > { %s28_s24 = sadd.s32 1, %s3803_s22  ;;  %p2826_p0 = scmp.ge.s32.totalorder %s3807_s23, 1  ;;  %s3807_s23 = sphi %s3848_s23, %s16_s23   ;;  %s3803_s22 = sphi %s3846_s22, %s4360_s22   ;;  %s3799_s21 = sphi %s3844_s21, %s4359_s21  }
   0x3   : > { %p30_p1 = scmp.ge.s32.totalorder %s28_s24, 2  ;;  %p249_p2 = scmp.lt.s32.totalorder %s3807_s23, 3 }
   0x5   : > { %s4362_s24 = smov (%p30_p1, %s28_s24), 0  ;;  %p250_p3 = pnand %p2826_p0, %p249_p2 }
   0x6   : > { %v3693_v0 = vld [vmem:[%s4349_s1] sm:$0xff] (!%p250_p3)   ;;  %v3695_v2 = vld [vmem:[%s4349_s1 + $0x8] sm:$0xff] (!%p250_p3)   ;;  %p296_p4 = scmp.lt.s32.totalorder (!%p250_p3), %s3799_s21, 1  ;;  %v3697_v4 = vld [vmem:[%s4349_s1 + $0x10] sm:$0xff] (!%p250_p3)   ;;  %vm511_vm0 = vsmask.f32 (!%p250_p3), 3328 }
   0x7   : > { %253 = sbr.rel (%p250_p3) target bundleno = 624 (0x270), region = 44  ;;  %v3694_v1 = vld [vmem:[%s4349_s1 + $0x100] sm:$0xff] (!%p250_p3)   ;;  %3364 = vmatprep.subr.bf16.mxu1 (!%p250_p3), %v3693_v0  ;;  %v3696_v3 = vld [vmem:[%s4349_s1 + $0x108] sm:$0xff] (!%p250_p3)   ;;  %v3698_v5 = vld [vmem:[%s4349_s1 + $0x110] sm:$0xff] (!%p250_p3)   ;;  %vm512_vm1 = vsmask.f32 (!%p250_p3), 7440 }
   0x8   : > { %3460 = vmatprep.subr.bf16.mxu0 (!%p250_p3), %v3694_v1  ;;  %3365 = vmatpush3.bf16.msra.mxu1 (!%p250_p3), %v3693_v0  ;;  %v3699_v6 = vld [vmem:[%s4349_s1 + $0x18] sm:$0xff] (!%p250_p3)   ;;  %v3701_v8 = vld [vmem:[%s4349_s1 + $0x20] sm:$0xff] (!%p250_p3)   ;;  %v3703_v10 = vld [vmem:[%s4349_s1 + $0x28] sm:$0xff] (!%p250_p3)   ;;  %vm828_vm3 = vcmask (!%p250_p3), 1042432   ;;  %vm829_vm4 = vcmask (!%p250_p3), 1046532  }
   0x9   : > { %3461 = vmatpush3.bf16.msra.mxu0 (!%p250_p3), %v3694_v1  ;;  %3366 = vmatprep.subr.bf16.mxu1 (!%p250_p3), %v3695_v2  ;;  %v3700_v7 = vld [vmem:[%s4349_s1 + $0x118] sm:$0xff] (!%p250_p3)   ;;  %v3702_v9 = vld [vmem:[%s4349_s1 + $0x120] sm:$0xff] (!%p250_p3)   ;;  %v3704_v12 = vld [vmem:[%s4349_s1 + $0x128] sm:$0xff] (!%p250_p3)  }
   0xa   : > { %3462 = vmatprep.subr.bf16.mxu0 (!%p250_p3), %v3696_v3  ;;  %v3705_v18 = vld [vmem:[%s4349_s1 + $0x30] sm:$0xff] (!%p250_p3)   ;;  %v3707_v27 = vld [vmem:[%s4349_s1 + $0x38] sm:$0xff] (!%p250_p3)   ;;  %vm3925_vm2 = vmor (!%p250_p3), %vm511_vm0, %vm512_vm1 }
   0xb   : > { %v3706_v23 = vld [vmem:[%s4349_s1 + $0x130] sm:$0xff] (!%p250_p3)   ;;  %v3708_v30 = vld [vmem:[%s4349_s1 + $0x138] sm:$0xff] (!%p250_p3)   ;;  %v3710_v46 = vld [vmem:[%s4349_s1 + $0x40] sm:$0xff] (!%p250_p3)  }
   0xc   : > { %3367 = vmatpush3.bf16.msra.mxu1 (!%p250_p3), %v3695_v2  ;;  %v3711_v52 = vld [vmem:[%s4349_s1 + $0x140] sm:$0xff] (!%p250_p3)   ;;  %v3713_v63 = vld [vmem:[%s4349_s1 + $0x48] sm:$0xff] (!%p250_p3)   ;;  %vm4012_vm5 = vmor (!%p250_p3), %vm828_vm3, %vm829_vm4 }
   0xd   : > { %3463 = vmatpush3.bf16.msra.mxu0 (!%p250_p3), %v3696_v3  ;;  %3368 = vmatprep.subr.bf16.mxu1 (!%p250_p3), %v3697_v4  ;;  %v3714_v3 = vld [vmem:[%s4349_s1 + $0x148] sm:$0xff] (!%p250_p3)  }
   0xe   : > { %s4364_s21 = smov (!%p296_p4, %s3799_s21), 1  ;;  %3464 = vmatprep.subr.bf16.mxu0 %v3698_v5 }
   0xf   : > { %s3668_s17 = smul.u32 80, %s4364_s21  ;;  %s3192_s13 = sshll.u32 %s4364_s21, 5 }
  0x10   : > { %3369 = vmatpush3.bf16.msra.mxu1 %v3697_v4  ;;  %s313_s16 = scalar_lea.vmem %s4353_s5, %s3192_s13  ;;  %s323_s19 = scalar_lea.vmem %s4354_s6, %s3192_s13 }
  0x11   : > { %3465 = vmatpush3.bf16.msra.mxu0 %v3698_v5  ;;  %3370 = vmatprep.subr.bf16.mxu1 %v3699_v6  ;;  %s3901_s30 = scalar_lea.vmem %s4348_s0, %s3668_s17  ;;  %v3715_v5 = vld [vmem:[%s4349_s1 + $0x50] sm:$0xff]  }
  0x12   : > { %3466 = vmatprep.subr.bf16.mxu0 %v3700_v7  ;;  %v3709_v11 = vld [vmem:[%s3901_s30] ss:$8 sps:$4 sm:$0xff]   ;;  %v2945_v14 = vld [vmem:[%s3901_s30 + $0xc] sm:$0x1]  ;;  %v2946_v15 = vld [vmem:[%s3901_s30 + $0x10] sm:$0xf] }
  0x13   : > { %3380 = vmatprep.mubr.bf16.mxu1 %v3709_v11  ;;  %v2944_v13 = vld [vmem:[%s3901_s30 + $0x8] sm:$0xf]  ;;  %v2947_v19 = vld [vmem:[%s3901_s30 + $0x14] sm:$0x1]  ;;  %v1246_v20 = vshll.u32 %v2945_v14, 16  ;;  %v1251_v21 = vshrl.u32 %v2946_v15, 16 }
  0x14   : > { %3371 = vmatpush3.bf16.msra.mxu1 %v3699_v6  ;;  %v1237_v16 = vshrl.u32 %v2944_v13, 16  ;;  %v1240_v17 = vshll.u32 %v2944_v13, 16  ;;  %v1254_v22 = vshll.u32 %v2946_v15, 16  ;;  %v1260_v26 = vshll.u32 %v2947_v19, 16  ;;  %v2948_v36 = vld [vmem:[%s3901_s30 + $0x18] sm:$0xf] }
  0x15   : > { %3467 = vmatpush3.bf16.msra.mxu0 %v3700_v7  ;;  %3372 = vmatprep.subr.bf16.mxu1 %v3701_v8  ;;  %v1253_v28 = vrot.slane %v1251_v21, 4  ;;  %v1248_v32 = vrot.slane %v1246_v20, 5  ;;  %v2949_v37 = vld [vmem:[%s3901_s30 + $0x1c] sm:$0x1]  ;;  %v2950_v39 = vld [vmem:[%s3901_s30 + $0x20] sm:$0xf] }
  0x16   : > { %3468 = vmatprep.subr.bf16.mxu0 %v3702_v9  ;;  %v1239_v24 = vrot.slane %v1237_v16, 4  ;;  %v1242_v25 = vrot.slane %v1240_v17, 5  ;;  %v1256_v29 = vrot.slane %v1254_v22, 5  ;;  %v1262_v35 = vrot.slane %v1260_v26, 5  ;;  %v2951_v40 = vld [vmem:[%s3901_s30 + $0x24] sm:$0x1] }
  0x17   : > { %v1265_v41 = vshrl.u32 %v2948_v36, 16  ;;  %v1268_v43 = vshll.u32 %v2948_v36, 16  ;;  %v1274_v44 = vshll.u32 %v2949_v37, 16  ;;  %v1279_v45 = vshrl.u32 %v2950_v39, 16  ;;  %v3712_v53 = vld [vmem:[%s3901_s30 + $0x10] ss:$8 sps:$4 sm:$0xff]  }
  0x18   : > { %3373 = vmatpush3.bf16.msra.mxu1 %v3701_v8  ;;  %v1243_v31 = vor.u32 %v1242_v25, %v1239_v24  ;;  %v1257_v34 = vor.u32 %v1256_v29, %v1253_v28  ;;  %v1282_v49 = vshll.u32 %v2950_v39, 16  ;;  %v1288_v50 = vshll.u32 %v2951_v40, 16  ;;  %v3723_v6 = vld [vmem:[%s3901_s30 + $0x20] ss:$8 sps:$4 sm:$0xff]   ;;  %v3716_v7 = vld [vmem:[%s4349_s1 + $0x150] sm:$0xff]   ;;  %v3717_v8 = vld [vmem:[%s4349_s1 + $0x58] sm:$0xff]  }
  0x19   : > { %3469 = vmatpush3.bf16.msra.mxu0 %v3702_v9  ;;  %3374 = vmatprep.subr.bf16.mxu1 %v3703_v10  ;;  %v1267_v48 = vrot.slane %v1265_v41, 4  ;;  %v1270_v54 = vrot.slane %v1268_v43, 5  ;;  %v1276_v55 = vrot.slane %v1274_v44, 5  ;;  %v1281_v56 = vrot.slane %v1279_v45, 4  ;;  %v2952_v9 = vld [vmem:[%s3901_s30 + $0x28] sm:$0xf] }
  0x1a   : > { %3470 = vmatprep.subr.bf16.mxu0 %v3704_v12  ;;  %v1244_v38 = vrot.slane %v1243_v31, 4  ;;  %v1258_v42 = vrot.slane %v1257_v34, 4  ;;  %v1284_v58 = vrot.slane %v1282_v49, 5  ;;  %v1290_v59 = vrot.slane %v1288_v50, 5  ;;  %v2954_v11 = vld [vmem:[%s3901_s30 + $0x30] sm:$0xf] }
  0x1b   : > { %v1271_v60 = vor.u32 %v1270_v54, %v1267_v48  ;;  %v1293_v13 = vshrl.u32 %v2952_v9, 16  ;;  %v1296_v14 = vshll.u32 %v2952_v9, 16  ;;  %v1307_v16 = vshrl.u32 %v2954_v11, 16  ;;  %v3718_v19 = vld [vmem:[%s4349_s1 + $0x158] sm:$0xff]   ;;  %v3719_v20 = vld [vmem:[%s4349_s1 + $0x60] sm:$0xff]  }
  0x1c   : > { %3375 = vmatpush3.bf16.msra.mxu1 %v3703_v10  ;;  %v1249_v47 = vsel %vm3925_vm2, %v1244_v38, %v1248_v32  ;;  %v1263_v51 = vsel %vm3925_vm2, %v1258_v42, %v1262_v35  ;;  %v1285_v61 = vor.u32 %v1284_v58, %v1281_v56  ;;  %v2953_v10 = vld [vmem:[%s3901_s30 + $0x2c] sm:$0x1]  ;;  %v1310_v17 = vshll.u32 %v2954_v11, 16  ;;  %v2956_v29 = vld [vmem:[%s3901_s30 + $0x38] sm:$0xf]  ;;  %v3720_v38 = vld [vmem:[%s4349_s1 + $0x160] sm:$0xff]  }
  0x1d   : > { %3471 = vmatpush3.bf16.msra.mxu0 %v3704_v12  ;;  %3376 = vmatprep.subr.bf16.mxu1 %v3705_v18  ;;  %v2976_v57 = vcombine.low %v1249_v47, %v1263_v51  ;;  %v1272_v62 = vrot.slane %v1271_v60, 4  ;;  %v2955_v12 = vld [vmem:[%s3901_s30 + $0x34] sm:$0x1]  ;;  %v1302_v15 = vshll.u32 %v2953_v10, 16  ;;  %v1295_v21 = vrot.slane %v1293_v13, 4  ;;  %v3721_v47 = vld [vmem:[%s4349_s1 + $0x68] sm:$0xff]  }
  0x1e   : > { %3472 = vmatprep.subr.bf16.mxu0 %v3706_v23  ;;  %v1286_v0 = vrot.slane %v1285_v61, 4  ;;  %v1298_v22 = vrot.slane %v1296_v14, 5  ;;  %v1309_v24 = vrot.slane %v1307_v16, 4  ;;  %v1312_v25 = vrot.slane %v1310_v17, 5  ;;  %v2958_v31 = vld [vmem:[%s3901_s30 + $0x40] sm:$0xf] }
  0x1f   : > { %3476 = vmatprep.mubr.bf16.mxu0 %v2976_v57  ;;  %v1277_v1 = vsel %vm3925_vm2, %v1272_v62, %v1276_v55  ;;  %v2959_v34 = vld [vmem:[%s3901_s30 + $0x44] sm:$0x1]  ;;  %v1321_v35 = vshrl.u32 %v2956_v29, 16  ;;  %v1324_v36 = vshll.u32 %v2956_v29, 16  ;;  %v1335_v40 = vshrl.u32 %v2958_v31, 16  ;;  %v3722_v56 = vld [vmem:[%s4349_s1 + $0x168] sm:$0xff]  }
  0x20   : > { %3377 = vmatpush3.bf16.msra.mxu1 %v3705_v18  ;;  %v1291_v2 = vsel %vm3925_vm2, %v1286_v0, %v1290_v59  ;;  %v1316_v18 = vshll.u32 %v2955_v12, 16  ;;  %v1299_v28 = vor.u32 %v1298_v22, %v1295_v21  ;;  %v1313_v32 = vor.u32 %v1312_v25, %v1309_v24  ;;  %v495_v54 = vld [vmem:[%s3901_s30] sm:$0xf]  ;;  %v496_v55 = vld [vmem:[%s3901_s30 + $0x4] sm:$0x1]  ;;  %v3724_v57 = vld [vmem:[%s4349_s1 + $0x70] sm:$0xff]  }
  0x21   : > { %3473 = vmatpush3.bf16.msra.mxu0 %v3706_v23  ;;  %3378 = vmatprep.subr.bf16.mxu1 %v3707_v27  ;;  %v2977_v4 = vcombine.low %v1277_v1, %v1291_v2  ;;  %v1304_v23 = vrot.slane %v1302_v15, 5  ;;  %v1338_v41 = vshll.u32 %v2958_v31, 16  ;;  %v1344_v42 = vshll.u32 %v2959_v34, 16  ;;  %v497_v60 = vld [vmem:[%s3901_s30 + $0x8] sm:$0xf]  ;;  %v3725_v13 = vld [vmem:[%s4349_s1 + $0x170] sm:$0xff]  }
  0x22   : > { %3474 = vmatprep.subr.bf16.mxu0 %v3708_v30  ;;  %v1318_v26 = vrot.slane %v1316_v18, 5  ;;  %v1300_v39 = vrot.slane %v1299_v28, 4  ;;  %v1314_v43 = vrot.slane %v1313_v32, 4  ;;  %v1323_v44 = vrot.slane %v1321_v35, 4  ;;  %v498_v61 = vld [vmem:[%s3901_s30 + $0xc] sm:$0x1] }
  0x23   : > { %v1326_v45 = vrot.slane %v1324_v36, 5  ;;  %v1337_v49 = vrot.slane %v1335_v40, 4  ;;  %v1340_v50 = vrot.slane %v1338_v41, 5  ;;  %v1346_v51 = vrot.slane %v1344_v42, 5  ;;  %v2988_v12 = vld [vmem:[%s3901_s30 + $0x8] sm:$0xe] }
  0x24   : > { %3379 = vmatpush3.bf16.msra.mxu1 %v3707_v27  ;;  %v3726_v27 = vld [vmem:[%s3901_s30 + $0x30] ss:$8 sps:$4 sm:$0xff]   ;;  %v1305_v48 = vsel %vm3925_vm2, %v1300_v39, %v1304_v23  ;;  %v515_v62 = vshrl.u32 %v495_v54, 16  ;;  %v524_v1 = vshll.u32 %v496_v55, 16  ;;  %v529_v2 = vshrl.u32 %v497_v60, 16 }
  0x25   : > { %3475 = vmatpush3.bf16.msra.mxu0 %v3708_v30  ;;  %3388 = vmatprep.subr.bf16.mxu1 %v3710_v46  ;;  %v2957_v30 = vld [vmem:[%s3901_s30 + $0x3c] sm:$0x1]  ;;  %v1341_v59 = vor.u32 %v1340_v50, %v1337_v49  ;;  %v3004_v21 = vrot.slane %v2988_v12, 9  ;;  %v2991_v24 = vld [vmem:[%s3901_s30 + $0x14] sm:$0x1]  ;;  %v3729_v50 = vld [vmem:[%s4349_s1 + $0x80] sm:$0xff]  }
  0x26   : > { %3484 = vmatprep.subr.bf16.mxu0 %v3711_v52  ;;  %v1330_v37 = vshll.u32 %v2957_v30, 16  ;;  %v526_v9 = vrot.slane %v524_v1, 5  ;;  %v531_v10 = vrot.slane %v529_v2, 4  ;;  %v3727_v15 = vld [vmem:[%s4349_s1 + $0x78] sm:$0xff]   ;;  %v1556_v28 = vrot.slane %v2991_v24, 5  ;;  %v3733_v12 = vld [vmem:[%s4349_s1 + $0x90] sm:$0xff]  }
  0x27   : > { %3381 = vmatmul.mubr.bf16.vlgmr.msra.gmra.mrb[0].mxu1 %v3712_v53  ;;  %v1327_v53 = vor.u32 %v1326_v45, %v1323_v44  ;;  %v499_v29 = vld [vmem:[%s3901_s30 + $0x10] sm:$0xf]  ;;  %v500_v32 = vld [vmem:[%s3901_s30 + $0x14] sm:$0x1]  ;;  %v501_v34 = vld [vmem:[%s3901_s30 + $0x18] sm:$0xf] }
  0x28   : > { %3389 = vmatpush3.bf16.msra.mxu1 %v3710_v46  ;;  %3477 = vmatmul.mubr.bf16.vlgmr.msra.gmra.mrb[0].mxu0 %v2977_v4  ;;  %v1332_v46 = vrot.slane %v1330_v37, 5  ;;  %v1342_v4 = vrot.slane %v1341_v59, 4  ;;  %v543_v35 = vshrl.u32 %v499_v29, 16  ;;  %v3728_v36 = vld [vmem:[%s4349_s1 + $0x178] sm:$0xff]   ;;  %v546_v40 = vshll.u32 %v499_v29, 16 }
  0x29   : > { %3390 = vmatprep.subr.bf16.mxu1 %v3713_v63  ;;  %3485 = vmatpush3.bf16.msra.mxu0 %v3711_v52  ;;  %v1319_v52 = vsel %vm3925_vm2, %v1314_v43, %v1318_v26  ;;  %v1328_v0 = vrot.slane %v1327_v53, 4  ;;  %v502_v39 = vld [vmem:[%s3901_s30 + $0x1c] sm:$0x1]  ;;  %v552_v41 = vshll.u32 %v500_v32, 16  ;;  %v2992_v42 = vld [vmem:[%s3901_s30 + $0x18] sm:$0xe] }
  0x2a   : > { %3486 = vmatprep.subr.bf16.mxu0 %v3714_v3  ;;  %3384 = vmatprep.mubr.bf16.mxu1 %v3723_v6  ;;  %v2978_v58 = vcombine.low %v1305_v48, %v1319_v52  ;;  %v1347_v14 = vsel %vm3925_vm2, %v1342_v4, %v1346_v51  ;;  %v545_v45 = vrot.slane %v543_v35, 4  ;;  %v2994_v48 = vld [vmem:[%s3901_s30 + $0x20] sm:$0xe]  ;;  %v548_v51 = vrot.slane %v546_v40, 5  ;;  %v2996_v29 = vld [vmem:[%s3901_s30 + $0x28] sm:$0xe] }
  0x2b   : > { %v554_v52 = vrot.slane %v552_v41, 5  ;;  %v560_v53 = vshll.u32 %v501_v34, 16  ;;  %v2997_v32 = vld [vmem:[%s3901_s30 + $0x2c] sm:$0x1]  ;;  %v3735_v35 = vld [vmem:[%s4349_s1 + $0x98] sm:$0xff]  }
  0x2c   : > { %3391 = vmatpush3.bf16.msra.mxu1 %v3713_v63  ;;  %v518_v63 = vshll.u32 %v495_v54, 16  ;;  %3480 = vmatprep.mubr.bf16.mxu0 %v2978_v58  ;;  %v2995_v54 = vld [vmem:[%s3901_s30 + $0x24] sm:$0x1]  ;;  %v549_v59 = vor.u32 %v548_v51, %v545_v45  ;;  %v3780_v18 = vld [vmem:[%s4351_s3 + $0x18] sm:$0xff]  }
  0x2d   : > { %3392 = vmatprep.subr.bf16.mxu1 %v3715_v5  ;;  %3487 = vmatpush3.bf16.msra.mxu0 %v3714_v3  ;;  %v532_v3 = vshll.u32 %v497_v60, 16  ;;  %v562_v60 = vrot.slane %v560_v53, 5  ;;  %v3738_v45 = vld [vmem:[%s4349_s1 + $0x1a0] sm:$0xff]   ;;  %v510_v53 = vld [vmem:[%s3901_s30 + $0x3c] sm:$0x1] }
  0x2e   : > { %3488 = vmatprep.subr.bf16.mxu0 %v3716_v7  ;;  %v520_v6 = vrot.slane %v518_v63, 5  ;;  %v3730_v63 = vld [vmem:[%s4349_s1 + $0x180] sm:$0xff]   ;;  %v550_v1 = vrot.slane %v549_v59, 4  ;;  %v3000_v59 = vld [vmem:[%s3901_s30 + $0x38] sm:$0xe] }
  0x2f   : > { %3385 = vmatmul.mubr.bf16.gmra.mrb[4].mxu1 %v3726_v27  ;;  %v534_v11 = vrot.slane %v532_v3, 5  ;;  %v3125_v33 = vld [vmem:[%s3901_s30 + $0x24] sm:$0x1] }
  0x30   : > { %3393 = vmatpush3.bf16.msra.mxu1 %v3715_v5  ;;  %v517_v5 = vrot.slane %v515_v62, 4  ;;  %v1564_v62 = vrot.slane %v2995_v54, 5 }
  0x31   : > { %3394 = vmatprep.subr.bf16.mxu1 %v3717_v8  ;;  %3489 = vmatpush3.bf16.msra.mxu0 %v3716_v7  ;;  %v538_v7 = vshll.u32 %v498_v61, 16  ;;  %v535_v23 = vor.u32 %v534_v11, %v531_v10  ;;  %v3007_v61 = vrot.slane %v2994_v48, 9  ;;  %v3731_v11 = vld [vmem:[%s4349_s1 + $0x88] sm:$0xff]   ;;  %v507_v48 = vld [vmem:[%s3901_s30 + $0x30] sm:$0xf] }
  0x32   : > { %3490 = vmatprep.subr.bf16.mxu0 %v3718_v19  ;;  %v521_v16 = vor.u32 %v520_v6, %v517_v5  ;;  %v555_v5 = vsel %vm3925_vm2, %v550_v1, %v554_v52  ;;  %v509_v52 = vld [vmem:[%s3901_s30 + $0x38] sm:$0xf]  ;;  %v599_v54 = vshrl.u32 %v507_v48, 16  ;;  %v3002_v1 = vld [vmem:[%s3901_s30 + $0x40] sm:$0xe] }
  0x33   : > { %v540_v17 = vrot.slane %v538_v7, 5  ;;  %v536_v30 = vrot.slane %v535_v23, 4  ;;  %v1565_v4 = vsel %vm4012_vm5, %v3007_v61, %v1564_v62 }
  0x34   : > { %3395 = vmatpush3.bf16.msra.mxu1 %v3717_v8  ;;  %v1333_v8 = vsel %vm3925_vm2, %v1328_v0, %v1332_v46  ;;  %v522_v27 = vrot.slane %v521_v16, 4  ;;  %v557_v46 = vshrl.u32 %v501_v34, 16  ;;  %v505_v16 = vld [vmem:[%s3901_s30 + $0x28] sm:$0xf]  ;;  %v2998_v34 = vld [vmem:[%s3901_s30 + $0x30] sm:$0xe] }
  0x35   : > { %3396 = vmatprep.subr.bf16.mxu1 %v3719_v20  ;;  %3491 = vmatpush3.bf16.msra.mxu0 %v3718_v19  ;;  %v2989_v19 = vld [vmem:[%s3901_s30 + $0xc] sm:$0x1]  ;;  %v2979_v22 = vcombine.low %v1333_v8, %v1347_v14  ;;  %v541_v43 = vsel %vm3925_vm2, %v536_v30, %v540_v17  ;;  %v503_v14 = vld [vmem:[%s3901_s30 + $0x20] sm:$0xf]  ;;  %v588_v23 = vshll.u32 %v505_v16, 16  ;;  %v3009_v40 = vrot.slane %v2998_v34, 9 }
  0x36   : > { %3492 = vmatprep.subr.bf16.mxu0 %v3720_v38  ;;  %v1552_v25 = vrot.slane %v2989_v19, 5  ;;  %v527_v37 = vsel %vm3925_vm2, %v522_v27, %v526_v9  ;;  %v559_v55 = vrot.slane %v557_v46, 4  ;;  %v3732_v9 = vld [vmem:[%s4349_s1 + $0x188] sm:$0xff]   ;;  %v571_v19 = vshrl.u32 %v503_v14, 16 }
  0x37   : > { %3481 = vmatmul.mubr.bf16.gmra.mrb[4].mxu0 %v2979_v22  ;;  %v2860_v49 = vcombine.low %v527_v37, %v541_v43  ;;  %v506_v17 = vld [vmem:[%s3901_s30 + $0x2c] sm:$0x1]  ;;  %v585_v22 = vshrl.u32 %v505_v16, 16  ;;  %v2999_v37 = vld [vmem:[%s3901_s30 + $0x34] sm:$0x1]  ;;  %v601_v62 = vrot.slane %v599_v54, 4 }
  0x38   : > { %3397 = vmatpush3.bf16.msra.mxu1 %v3719_v20  ;;  %v2990_v20 = vld [vmem:[%s3901_s30 + $0x10] sm:$0xe]  ;;  %v1553_v31 = vsel %vm4012_vm5, %v3004_v21, %v1552_v25  ;;  %v563_v2 = vor.u32 %v562_v60, %v559_v55  ;;  %v594_v24 = vshll.u32 %v506_v17, 16  ;;  %v3736_v25 = vld [vmem:[%s4349_s1 + $0x198] sm:$0xff]   ;;  %v1572_v43 = vrot.slane %v2999_v37, 5 }
  0x39   : > { %3398 = vmatprep.subr.bf16.mxu1 %v3721_v47  ;;  %3493 = vmatpush3.bf16.msra.mxu0 %v3720_v38  ;;  %v3005_v26 = vrot.slane %v2990_v20, 9  ;;  %v574_v20 = vshll.u32 %v503_v14, 16  ;;  %v3001_v60 = vld [vmem:[%s3901_s30 + $0x3c] sm:$0x1] }
  0x3a   : > { %3494 = vmatprep.subr.bf16.mxu0 %v3722_v56  ;;  %3404 = vmatprep.mubr.bf16.mxu1 %v2860_v49  ;;  %v564_v6 = vrot.slane %v563_v2, 4  ;;  %v508_v49 = vld [vmem:[%s3901_s30 + $0x34] sm:$0x1]  ;;  %v1573_v51 = vsel %vm4012_vm5, %v3009_v40, %v1572_v43  ;;  %v3740_v2 = vld [vmem:[%s4349_s1 + $0x1a8] sm:$0xff]   ;;  %v3744_v37 = vld [vmem:[%s4349_s1 + $0x1b8] sm:$0xff]  }
  0x3b   : > { %v1557_v38 = vsel %vm4012_vm5, %v3005_v26, %v1556_v28  ;;  %v573_v26 = vrot.slane %v571_v19, 4  ;;  %v576_v27 = vrot.slane %v574_v20, 5  ;;  %v587_v28 = vrot.slane %v585_v22, 4  ;;  %v796_v20 = vld [vmem:[%s3901_s30] sm:$0xe] }
  0x3c   : > { %3399 = vmatpush3.bf16.msra.mxu1 %v3721_v47  ;;  %v3028_v44 = vcombine.low %v1553_v31, %v1557_v38  ;;  %v2993_v47 = vld [vmem:[%s3901_s30 + $0x1c] sm:$0x1]  ;;  %v590_v31 = vrot.slane %v588_v23, 5  ;;  %v3008_v38 = vrot.slane %v2996_v29, 9  ;;  %v797_v23 = vld [vmem:[%s3901_s30 + $0x4] sm:$0x1] }
  0x3d   : > { %3400 = vmatprep.subr.bf16.mxu1 %v3724_v57  ;;  %3495 = vmatpush3.bf16.msra.mxu0 %v3722_v56  ;;  %v566_v56 = vshll.u32 %v502_v39, 16  ;;  %v1560_v58 = vrot.slane %v2993_v47, 5  ;;  %v1568_v39 = vrot.slane %v2997_v32, 5  ;;  %v799_v29 = vld [vmem:[%s3901_s30 + $0xc] sm:$0x1]  ;;  %v3741_v32 = vld [vmem:[%s4349_s1 + $0xb0] sm:$0xff]  }
  0x3e   : > { %3496 = vmatprep.subr.bf16.mxu0 %v3725_v13  ;;  %3500 = vmatprep.mubr.bf16.mxu0 %v3028_v44  ;;  %v591_v41 = vor.u32 %v590_v31, %v587_v28  ;;  %v3737_v44 = vld [vmem:[%s4349_s1 + $0xa0] sm:$0xff]   ;;  %v800_v43 = vld [vmem:[%s3901_s30 + $0x10] sm:$0xe] }
  0x3f   : > { %v568_v3 = vrot.slane %v566_v56, 5  ;;  %v1569_v47 = vsel %vm4012_vm5, %v3008_v38, %v1568_v39  ;;  %v3746_v39 = vld [vmem:[%s3901_s30 + $0x10] ss:$8 sps:$4 sm:$0xff]  }
  0x40   : > { %3401 = vmatpush3.bf16.msra.mxu1 %v3724_v57  ;;  %v3006_v57 = vrot.slane %v2992_v42, 9  ;;  %v596_v42 = vrot.slane %v594_v24, 5  ;;  %v3030_v56 = vcombine.low %v1569_v47, %v1573_v51  ;;  %v798_v24 = vld [vmem:[%s3901_s30 + $0x8] sm:$0xe]  ;;  %v803_v47 = vld [vmem:[%s3901_s30 + $0x1c] sm:$0x1] }
  0x41   : > { %3402 = vmatprep.subr.bf16.mxu1 %v3727_v15  ;;  %3497 = vmatpush3.bf16.msra.mxu0 %v3725_v13  ;;  %v569_v8 = vsel %vm3925_vm2, %v564_v6, %v568_v3  ;;  %v3734_v13 = vld [vmem:[%s4349_s1 + $0x190] sm:$0xff]   ;;  %v622_v6 = vshll.u32 %v510_v53, 16  ;;  %v2873_v31 = vrot.slane %v798_v24, 9  ;;  %v845_v51 = vrot.slane %v803_v47, 5  ;;  %v3745_v53 = vld [vmem:[%s4349_s1 + $0xc0] sm:$0xff]  }
  0x42   : > { %v1561_v0 = vsel %vm4012_vm5, %v3006_v57, %v1560_v58  ;;  %3498 = vmatprep.subr.bf16.mxu0 %v3728_v36  ;;  %v2861_v10 = vcombine.low %v555_v5, %v569_v8  ;;  %v602_v57 = vshll.u32 %v507_v48, 16  ;;  %v608_v58 = vshll.u32 %v508_v49, 16  ;;  %v3762_v24 = vld [vmem:[%s3901_s30 + $0x40] ss:$8 sps:$4 sm:$0xff]  }
  0x43   : > { %v3029_v7 = vcombine.low %v1561_v0, %v1565_v4  ;;  %v616_v0 = vshll.u32 %v509_v52, 16  ;;  %v624_v14 = vrot.slane %v622_v6, 5  ;;  %v2874_v48 = vrot.slane %v800_v43, 9  ;;  %v808_v6 = vld [vmem:[%s3901_s30 + $0x30] sm:$0xe] }
  0x44   : > { %3403 = vmatpush3.bf16.msra.mxu1 %v3727_v15  ;;  %v504_v15 = vld [vmem:[%s3901_s30 + $0x24] sm:$0x1]  ;;  %v604_v4 = vrot.slane %v602_v57, 5  ;;  %v610_v5 = vrot.slane %v608_v58, 5  ;;  %v3750_v58 = vld [vmem:[%s4349_s1 + $0x1c8] sm:$0xff]  }
  0x45   : > { %3412 = vmatprep.subr.bf16.mxu1 %v3729_v50  ;;  %3499 = vmatpush3.bf16.msra.mxu0 %v3728_v36  ;;  %v580_v21 = vshll.u32 %v504_v15, 16  ;;  %v577_v36 = vor.u32 %v576_v27, %v573_v26  ;;  %v3011_v15 = vrot.slane %v3002_v1, 9  ;;  %v3742_v26 = vld [vmem:[%s4349_s1 + $0x1b0] sm:$0xff]   ;;  %v807_v1 = vld [vmem:[%s3901_s30 + $0x2c] sm:$0x1] }
  0x46   : > { %3508 = vmatprep.subr.bf16.mxu0 %v3730_v63 }
  0x47   : > { %3405 = vmatmul.mubr.bf16.vlgmr.msra.gmra.mrb[0].mxu1 %v2861_v10  ;;  %v582_v30 = vrot.slane %v580_v21, 5  ;;  %v578_v46 = vrot.slane %v577_v36, 4  ;;  %v3010_v10 = vrot.slane %v3000_v59, 9  ;;  %v3749_v59 = vld [vmem:[%s4349_s1 + $0xc8] sm:$0xff]  }
  0x48   : > { %3501 = vmatmul.mubr.bf16.vlgmr.msra.gmra.mrb[0].mxu0 %v3029_v7  ;;  %3413 = vmatpush3.bf16.msra.mxu1 %v3729_v50  ;;  %v592_v50 = vrot.slane %v591_v41, 4  ;;  %v3003_v7 = vld [vmem:[%s3901_s30 + $0x44] sm:$0x1]  ;;  %v3743_v41 = vld [vmem:[%s4349_s1 + $0xb8] sm:$0xff]  }
  0x49   : > { %3509 = vmatpush3.bf16.msra.mxu0 %v3730_v63  ;;  %3414 = vmatprep.subr.bf16.mxu1 %v3731_v11  ;;  %v583_v55 = vsel %vm3925_vm2, %v578_v46, %v582_v30  ;;  %v613_v63 = vshrl.u32 %v509_v52, 16  ;;  %v1580_v16 = vrot.slane %v3003_v7, 5  ;;  %v833_v30 = vrot.slane %v797_v23, 5  ;;  %v802_v46 = vld [vmem:[%s3901_s30 + $0x18] sm:$0xe]  ;;  %v3747_v52 = vld [vmem:[%s4349_s1 + $0x1c0] sm:$0xff]  }
  0x4a   : > { %3510 = vmatprep.subr.bf16.mxu0 %v3732_v9  ;;  %v597_v61 = vsel %vm3925_vm2, %v592_v50, %v596_v42  ;;  %3504 = vmatprep.mubr.bf16.mxu0 %v3030_v56  ;;  %v2875_v50 = vrot.slane %v802_v46, 9  ;;  %v3748_v56 = vld [vmem:[%s3901_s30 + $0x20] ss:$8 sps:$4 sm:$0xff]   ;;  %v809_v7 = vld [vmem:[%s3901_s30 + $0x34] sm:$0x1] }
  0x4b   : > { %v2862_v3 = vcombine.low %v583_v55, %v597_v61  ;;  %v615_v8 = vrot.slane %v613_v63, 4  ;;  %v1581_v22 = vsel %vm4012_vm5, %v3011_v15, %v1580_v16  ;;  %v3752_v61 = vld [vmem:[%s4349_s1 + $0x1d0] sm:$0xff]   ;;  %v805_v63 = vld [vmem:[%s3901_s30 + $0x24] sm:$0x1] }
  0x4c   : > { %3415 = vmatpush3.bf16.msra.mxu1 %v3731_v11  ;;  %v1576_v11 = vrot.slane %v3001_v60, 5  ;;  %v846_v55 = vsel %vm4012_vm5, %v2875_v50, %v845_v51  ;;  %v3751_v60 = vld [vmem:[%s4349_s1 + $0xd0] sm:$0xff]   ;;  %v3081_v50 = vld [vmem:[%s3901_s30 + $0x24] sm:$0x1]  ;;  %v3082_v51 = vld [vmem:[%s3901_s30 + $0x28] sm:$0xf] }
  0x4d   : > { %3511 = vmatpush3.bf16.msra.mxu0 %v3732_v9  ;;  %3416 = vmatprep.subr.bf16.mxu1 %v3733_v12  ;;  %v618_v9 = vrot.slane %v616_v0, 5  ;;  %v806_v0 = vld [vmem:[%s3901_s30 + $0x28] sm:$0xe] }
  0x4e   : > { %3512 = vmatprep.subr.bf16.mxu0 %v3734_v13  ;;  %3408 = vmatprep.mubr.bf16.mxu1 %v2862_v3  ;;  %v1577_v19 = vsel %vm4012_vm5, %v3010_v10, %v1576_v11  ;;  %v849_v3 = vrot.slane %v805_v63, 5  ;;  %v811_v10 = vld [vmem:[%s3901_s30 + $0x3c] sm:$0x1]  ;;  %v2878_v11 = vrot.slane %v808_v6, 9 }
  0x4f   : > { %v619_v17 = vor.u32 %v618_v9, %v615_v8  ;;  %v3031_v28 = vcombine.low %v1577_v19, %v1581_v22  ;;  %v810_v9 = vld [vmem:[%s3901_s30 + $0x38] sm:$0xe]  ;;  %v861_v16 = vrot.slane %v811_v10, 5 }
  0x50   : > { %3417 = vmatpush3.bf16.msra.mxu1 %v3733_v12  ;;  %v3739_v12 = vld [vmem:[%s4349_s1 + $0xa8] sm:$0xff]   ;;  %v2879_v15 = vrot.slane %v810_v9, 9  ;;  %v3760_v22 = vld [vmem:[%s3901_s30 + $0x30] ss:$8 sps:$4 sm:$0xff]  }
  0x51   : > { %3513 = vmatpush3.bf16.msra.mxu0 %v3734_v13  ;;  %3418 = vmatprep.subr.bf16.mxu1 %v3735_v35  ;;  %v605_v13 = vor.u32 %v604_v4, %v601_v62  ;;  %v620_v27 = vrot.slane %v619_v17, 4  ;;  %v804_v62 = vld [vmem:[%s3901_s30 + $0x20] sm:$0xe]  ;;  %v2877_v4 = vrot.slane %v806_v0, 9  ;;  %v3754_v17 = vld [vmem:[%s4349_s1 + $0x1d8] sm:$0xff]  }
  0x52   : > { %3514 = vmatprep.subr.bf16.mxu0 %v3736_v25  ;;  %3505 = vmatmul.mubr.bf16.gmra.mrb[4].mxu0 %v3031_v28  ;;  %v3757_v28 = vld [vmem:[%s4349_s1 + $0xe8] sm:$0xff]  }
  0x53   : > { %v606_v21 = vrot.slane %v605_v13, 4  ;;  %v625_v36 = vsel %vm3925_vm2, %v620_v27, %v624_v14  ;;  %3524 = vmatprep.mubr.bf16.mxu0 %v3746_v39  ;;  %v3753_v13 = vld [vmem:[%s4349_s1 + $0xd8] sm:$0xff]   ;;  %v3765_v27 = vld [vmem:[%s3901_s30 + $0x8] ss:$8 sps:$4 sm:$0xff]  }
  0x54   : > { %3419 = vmatpush3.bf16.msra.mxu1 %v3735_v35  ;;  %v837_v35 = vrot.slane %v799_v29, 5  ;;  %v3758_v29 = vld [vmem:[%s4349_s1 + $0x1e8] sm:$0xff]  }
  0x55   : > { %3515 = vmatpush3.bf16.msra.mxu0 %v3736_v25  ;;  %3420 = vmatprep.subr.bf16.mxu1 %v3737_v44  ;;  %v2872_v25 = vrot.slane %v796_v20, 9  ;;  %v611_v34 = vsel %vm3925_vm2, %v606_v21, %v610_v5  ;;  %v853_v5 = vrot.slane %v807_v1, 5  ;;  %v862_v21 = vsel %vm4012_vm5, %v2879_v15, %v861_v16  ;;  %v3764_v1 = vld [vmem:[%s4349_s1 + $0x1f8] sm:$0xff]  }
  0x56   : > { %3516 = vmatprep.subr.bf16.mxu0 %v3738_v45  ;;  %v2863_v40 = vcombine.low %v611_v34, %v625_v36  ;;  %v838_v42 = vsel %vm4012_vm5, %v2873_v31, %v837_v35  ;;  %v3077_v31 = vld [vmem:[%s3901_s30 + $0x14] sm:$0x1]  ;;  %v3079_v34 = vld [vmem:[%s3901_s30 + $0x1c] sm:$0x1]  ;;  %v3766_v15 = vld [vmem:[%s3901_s30 + $0x18] ss:$8 sps:$4 sm:$0xff]  }
  0x57   : > { %v834_v38 = vsel %vm4012_vm5, %v2872_v25, %v833_v30  ;;  %v854_v14 = vsel %vm4012_vm5, %v2877_v4, %v853_v5  ;;  %v3756_v25 = vld [vmem:[%s4349_s1 + $0x1e0] sm:$0xff]   ;;  %v3076_v30 = vld [vmem:[%s3901_s30 + $0x10] sm:$0xf]  ;;  %v3763_v5 = vld [vmem:[%s4349_s1 + $0xf8] sm:$0xff]  }
  0x58   : > { %3421 = vmatpush3.bf16.msra.mxu1 %v3737_v44  ;;  %v2896_v44 = vcombine.low %v834_v38, %v838_v42  ;;  %v1956_v35 = vshrl.u32 %v3076_v30, 16  ;;  %v1959_v36 = vshll.u32 %v3076_v30, 16 }
  0x59   : > { %3517 = vmatpush3.bf16.msra.mxu0 %v3738_v45  ;;  %3422 = vmatprep.subr.bf16.mxu1 %v3739_v12  ;;  %v801_v45 = vld [vmem:[%s3901_s30 + $0x14] sm:$0x1] }
  0x5a   : > { %3518 = vmatprep.subr.bf16.mxu0 %v3740_v2  ;;  %3409 = vmatmul.mubr.bf16.gmra.mrb[4].mxu1 %v2863_v40  ;;  %v841_v49 = vrot.slane %v801_v45, 5  ;;  %v1979_v40 = vshll.u32 %v3079_v34, 16  ;;  %v1958_v42 = vrot.slane %v1956_v35, 4  ;;  %v1961_v43 = vrot.slane %v1959_v36, 5  ;;  %v3089_v34 = vld [vmem:[%s3901_s30 + $0x44] sm:$0x1] }
  0x5b   : > { %3428 = vmatprep.mubr.bf16.mxu1 %v2896_v44 }
  0x5c   : > { %3423 = vmatpush3.bf16.msra.mxu1 %v3739_v12  ;;  %v842_v54 = vsel %vm4012_vm5, %v2874_v48, %v841_v49  ;;  %v857_v12 = vrot.slane %v809_v7, 5  ;;  %v1981_v47 = vrot.slane %v1979_v40, 5  ;;  %v3080_v48 = vld [vmem:[%s3901_s30 + $0x20] sm:$0xf]  ;;  %v1962_v49 = vor.u32 %v1961_v43, %v1958_v42 }
  0x5d   : > { %3519 = vmatpush3.bf16.msra.mxu0 %v3740_v2  ;;  %3424 = vmatprep.subr.bf16.mxu1 %v3741_v32  ;;  %v2897_v57 = vcombine.low %v842_v54, %v846_v55  ;;  %v2876_v2 = vrot.slane %v804_v62, 9  ;;  %v1984_v55 = vshrl.u32 %v3080_v48, 16 }
  0x5e   : > { %3520 = vmatprep.subr.bf16.mxu0 %v3742_v26  ;;  %v858_v20 = vsel %vm4012_vm5, %v2878_v11, %v857_v12 }
  0x5f   : > { %v850_v8 = vsel %vm4012_vm5, %v2876_v2, %v849_v3  ;;  %v2899_v23 = vcombine.low %v858_v20, %v862_v21  ;;  %v1986_v63 = vrot.slane %v1984_v55, 4  ;;  %v3769_v20 = vld [vmem:[%s3901_s30 + $0x28] ss:$8 sps:$4 sm:$0xff]   ;;  %v3085_v21 = vld [vmem:[%s3901_s30 + $0x34] sm:$0x1] }
  0x60   : > { %3425 = vmatpush3.bf16.msra.mxu1 %v3741_v32  ;;  %v2898_v19 = vcombine.low %v850_v8, %v854_v14  ;;  %v3078_v32 = vld [vmem:[%s3901_s30 + $0x18] sm:$0xf] }
  0x61   : > { %3521 = vmatpush3.bf16.msra.mxu0 %v3742_v26  ;;  %3426 = vmatprep.subr.bf16.mxu1 %v3743_v41  ;;  %v3755_v26 = vld [vmem:[%s4349_s1 + $0xe0] sm:$0xff]   ;;  %v1970_v38 = vshrl.u32 %v3078_v32, 16  ;;  %v1973_v39 = vshll.u32 %v3078_v32, 16 }
  0x62   : > { %3522 = vmatprep.subr.bf16.mxu0 %v3744_v37 }
  0x63   : > { %v1972_v45 = vrot.slane %v1970_v38, 4  ;;  %v1975_v46 = vrot.slane %v1973_v39, 5  ;;  %v3090_v39 = vld [vmem:[%s3901_s30 + $0x48] sm:$0xf] }
  0x64   : > { %3427 = vmatpush3.bf16.msra.mxu1 %v3743_v41  ;;  %v3761_v41 = vld [vmem:[%s4349_s1 + $0x1f0] sm:$0xff]  }
  0x65   : > { %3523 = vmatpush3.bf16.msra.mxu0 %v3744_v37  ;;  %3436 = vmatprep.subr.bf16.mxu1 %v3745_v53  ;;  %v1965_v37 = vshll.u32 %v3077_v31, 16  ;;  %v1976_v54 = vor.u32 %v1975_v46, %v1972_v45  ;;  %v3771_v46 = vld [vmem:[%s4349_s1 + $0x210] sm:$0xff]  }
  0x66   : > { %3532 = vmatprep.subr.bf16.mxu0 %v3747_v52 }
  0x67   : > { %3429 = vmatmul.mubr.bf16.vlgmr.msra.gmra.mrb[0].mxu1 %v2897_v57  ;;  %v1967_v44 = vrot.slane %v1965_v37, 5  ;;  %v1993_v57 = vshll.u32 %v3081_v50, 16  ;;  %v1977_v62 = vrot.slane %v1976_v54, 4  ;;  %v2054_v50 = vshrl.u32 %v3090_v39, 16  ;;  %v3770_v54 = vld [vmem:[%s3901_s30 + $0x38] ss:$8 sps:$4 sm:$0xff]  }
  0x68   : > { %3525 = vmatmul.mubr.bf16.vlgmr.msra.gmra.mrb[0].mxu0 %v3748_v56  ;;  %3437 = vmatpush3.bf16.msra.mxu1 %v3745_v53  ;;  %v3759_v53 = vld [vmem:[%s4349_s1 + $0xf0] sm:$0xff]   ;;  %v1987_v56 = vshll.u32 %v3080_v48, 16 }
  0x69   : > { %3533 = vmatpush3.bf16.msra.mxu0 %v3747_v52  ;;  %3438 = vmatprep.subr.bf16.mxu1 %v3749_v59  ;;  %v3083_v52 = vld [vmem:[%s3901_s30 + $0x2c] sm:$0x1]  ;;  %v1982_v6 = vsel %vm3925_vm2, %v1977_v62, %v1981_v47  ;;  %v1995_v8 = vrot.slane %v1993_v57, 5  ;;  %v2056_v57 = vrot.slane %v2054_v50, 4  ;;  %v3120_v62 = vld [vmem:[%s3901_s30 + $0x10] sm:$0xe] }
  0x6a   : > { %3534 = vmatprep.subr.bf16.mxu0 %v3750_v58  ;;  %3432 = vmatprep.mubr.bf16.mxu1 %v2898_v19  ;;  %v1989_v0 = vrot.slane %v1987_v56, 5 }
  0x6b   : > { %3528 = vmatprep.mubr.bf16.mxu0 %v3760_v22  ;;  %v3086_v22 = vld [vmem:[%s3901_s30 + $0x38] sm:$0xf] }
  0x6c   : > { %3439 = vmatpush3.bf16.msra.mxu1 %v3749_v59  ;;  %v1998_v59 = vshrl.u32 %v3082_v51, 16  ;;  %v1990_v7 = vor.u32 %v1989_v0, %v1986_v63  ;;  %v2026_v30 = vshrl.u32 %v3086_v22, 16  ;;  %v2029_v31 = vshll.u32 %v3086_v22, 16  ;;  %v3775_v22 = vld [vmem:[%s4349_s1 + $0x230] sm:$0xff]  }
  0x6d   : > { %3535 = vmatpush3.bf16.msra.mxu0 %v3750_v58  ;;  %3440 = vmatprep.subr.bf16.mxu1 %v3751_v60  ;;  %v1963_v58 = vrot.slane %v1962_v49, 4  ;;  %v2049_v49 = vshll.u32 %v3089_v34, 16 }
  0x6e   : > { %3536 = vmatprep.subr.bf16.mxu0 %v3752_v61  ;;  %v2000_v3 = vrot.slane %v1998_v59, 4  ;;  %v1991_v12 = vrot.slane %v1990_v7, 4  ;;  %v2031_v42 = vrot.slane %v2029_v31, 5  ;;  %v3123_v7 = vld [vmem:[%s3901_s30 + $0x1c] sm:$0x1]  ;;  %v2279_v31 = vrot.slane %v3125_v33, 5 }
  0x6f   : > { %3433 = vmatmul.mubr.bf16.gmra.mrb[4].mxu1 %v2899_v23  ;;  %v1968_v2 = vsel %vm3925_vm2, %v1963_v58, %v1967_v44  ;;  %v3087_v23 = vld [vmem:[%s3901_s30 + $0x3c] sm:$0x1]  ;;  %v3091_v44 = vld [vmem:[%s3901_s30 + $0x4c] sm:$0x1]  ;;  %v2051_v59 = vrot.slane %v2049_v49, 5 }
  0x70   : > { %3441 = vmatpush3.bf16.msra.mxu1 %v3751_v60  ;;  %3529 = vmatmul.mubr.bf16.gmra.mrb[4].mxu0 %v3762_v24  ;;  %v2001_v60 = vshll.u32 %v3082_v51, 16  ;;  %v3108_v9 = vcombine.low %v1968_v2, %v1982_v6  ;;  %v1996_v16 = vsel %vm3925_vm2, %v1991_v12, %v1995_v8  ;;  %v2035_v32 = vshll.u32 %v3087_v23, 16  ;;  %v3122_v2 = vld [vmem:[%s3901_s30 + $0x18] sm:$0xe]  ;;  %v3124_v23 = vld [vmem:[%s3901_s30 + $0x20] sm:$0xe] }
  0x71   : > { %3537 = vmatpush3.bf16.msra.mxu0 %v3752_v61  ;;  %3442 = vmatprep.subr.bf16.mxu1 %v3753_v13  ;;  %v2007_v61 = vshll.u32 %v3083_v52, 16  ;;  %v2057_v52 = vshll.u32 %v3090_v39, 16 }
  0x72   : > { %3538 = vmatprep.subr.bf16.mxu0 %v3754_v17  ;;  %3452 = vmatprep.mubr.bf16.mxu1 %v3765_v27  ;;  %v2003_v4 = vrot.slane %v2001_v60, 5  ;;  %v2037_v43 = vrot.slane %v2035_v32, 5 }
  0x73   : > { %v2009_v11 = vrot.slane %v2007_v61, 5  ;;  %3548 = vmatprep.mubr.bf16.mxu0 %v3108_v9  ;;  %v2059_v60 = vrot.slane %v2057_v52, 5  ;;  %v3137_v9 = vrot.slane %v3122_v2, 9 }
  0x74   : > { %3443 = vmatpush3.bf16.msra.mxu1 %v3753_v13  ;;  %v2004_v10 = vor.u32 %v2003_v4, %v2000_v3  ;;  %v3767_v13 = vld [vmem:[%s4349_s1 + $0x200] sm:$0xff]   ;;  %v3136_v3 = vrot.slane %v3120_v62, 9  ;;  %v3772_v4 = vld [vmem:[%s4349_s1 + $0x218] sm:$0xff]   ;;  %v3783_v62 = vld [vmem:[%s4351_s3 + $0x30] sm:$0xff]  }
  0x75   : > { %3539 = vmatpush3.bf16.msra.mxu0 %v3754_v17  ;;  %3444 = vmatprep.subr.bf16.mxu1 %v3755_v26  ;;  %v3084_v17 = vld [vmem:[%s3901_s30 + $0x30] sm:$0xf]  ;;  %v2060_v6 = vor.u32 %v2059_v60, %v2056_v57  ;;  %v3777_v57 = vld [vmem:[%s4351_s3] sm:$0xff]  }
  0x76   : > { %3540 = vmatprep.subr.bf16.mxu0 %v3756_v25  ;;  %v2005_v14 = vrot.slane %v2004_v10, 4  ;;  %v2015_v27 = vshll.u32 %v3084_v17, 16  ;;  %v3781_v60 = vld [vmem:[%s4351_s3 + $0x20] sm:$0xff]  }
  0x78   : > { %3445 = vmatpush3.bf16.msra.mxu1 %v3755_v26  ;;  %v2010_v19 = vsel %vm3925_vm2, %v2005_v14, %v2009_v11  ;;  %v2012_v26 = vshrl.u32 %v3084_v17, 16  ;;  %v2017_v37 = vrot.slane %v2015_v27, 5  ;;  %v2275_v11 = vrot.slane %v3123_v7, 5  ;;  %v3129_v27 = vld [vmem:[%s3901_s30 + $0x34] sm:$0x1] }
  0x79   : > { %3541 = vmatpush3.bf16.msra.mxu0 %v3756_v25  ;;  %3446 = vmatprep.subr.bf16.mxu1 %v3757_v28  ;;  %v3109_v24 = vcombine.low %v1996_v16, %v2010_v19  ;;  %v3768_v25 = vld [vmem:[%s4349_s1 + $0x208] sm:$0xff]   ;;  %v3773_v16 = vld [vmem:[%s4349_s1 + $0x220] sm:$0xff]  }
  0x7a   : > { %3542 = vmatprep.subr.bf16.mxu0 %v3758_v29  ;;  %v2014_v36 = vrot.slane %v2012_v26, 4  ;;  %v3128_v26 = vld [vmem:[%s3901_s30 + $0x30] sm:$0xe] }
  0x7c   : > { %3447 = vmatpush3.bf16.msra.mxu1 %v3757_v28  ;;  %v2021_v28 = vshll.u32 %v3085_v21, 16  ;;  %v2018_v47 = vor.u32 %v2017_v37, %v2014_v36  ;;  %v3774_v21 = vld [vmem:[%s4349_s1 + $0x228] sm:$0xff]   ;;  %v3140_v36 = vrot.slane %v3128_v26, 9  ;;  %v2287_v37 = vrot.slane %v3129_v27, 5 }
  0x7d   : > { %3543 = vmatpush3.bf16.msra.mxu0 %v3758_v29  ;;  %3448 = vmatprep.subr.bf16.mxu1 %v3759_v53  ;;  %v3088_v29 = vld [vmem:[%s3901_s30 + $0x40] sm:$0xf] }
  0x7e   : > { %3544 = vmatprep.subr.bf16.mxu0 %v3761_v41  ;;  %v2040_v35 = vshrl.u32 %v3088_v29, 16  ;;  %v2023_v38 = vrot.slane %v2021_v28, 5  ;;  %v2043_v40 = vshll.u32 %v3088_v29, 16  ;;  %v2019_v55 = vrot.slane %v2018_v47, 4  ;;  %v3130_v28 = vld [vmem:[%s3901_s30 + $0x38] sm:$0xe] }
  0x7f   : > { %v3131_v29 = vld [vmem:[%s3901_s30 + $0x3c] sm:$0x1]  ;;  %v3135_v47 = vld [vmem:[%s3901_s30 + $0x4c] sm:$0x1] }
  0x80   : > { %3449 = vmatpush3.bf16.msra.mxu1 %v3759_v53  ;;  %v2042_v45 = vrot.slane %v2040_v35, 4  ;;  %v2045_v48 = vrot.slane %v2043_v40, 5  ;;  %v2063_v53 = vshll.u32 %v3091_v44, 16  ;;  %v2024_v63 = vsel %vm3925_vm2, %v2019_v55, %v2023_v38  ;;  %v3776_v35 = vld [vmem:[%s4349_s1 + $0x238] sm:$0xff]  }
  0x81   : > { %3545 = vmatpush3.bf16.msra.mxu0 %v3761_v41  ;;  %3450 = vmatprep.subr.bf16.mxu1 %v3763_v5  ;;  %v2028_v41 = vrot.slane %v2026_v30, 4  ;;  %v3138_v30 = vrot.slane %v3124_v23, 9  ;;  %v3141_v38 = vrot.slane %v3130_v28, 9  ;;  %v2291_v39 = vrot.slane %v3131_v29, 5 }
  0x82   : > { %3546 = vmatprep.subr.bf16.mxu0 %v3764_v1  ;;  %v2046_v56 = vor.u32 %v2045_v48, %v2042_v45  ;;  %v2065_v61 = vrot.slane %v2063_v53, 5  ;;  %v3133_v45 = vld [vmem:[%s3901_s30 + $0x44] sm:$0x1]  ;;  %v2299_v53 = vrot.slane %v3135_v47, 5 }
  0x83   : > { %v2032_v51 = vor.u32 %v2031_v42, %v2028_v41  ;;  %v2280_v40 = vsel %vm4012_vm5, %v3138_v30, %v2279_v31  ;;  %v3132_v42 = vld [vmem:[%s3901_s30 + $0x40] sm:$0xe]  ;;  %v2292_v44 = vsel %vm4012_vm5, %v3141_v38, %v2291_v39 }
  0x84   : > { %3451 = vmatpush3.bf16.msra.mxu1 %v3763_v5  ;;  %v2047_v0 = vrot.slane %v2046_v56, 4  ;;  %v3142_v49 = vrot.slane %v3132_v42, 9  ;;  %v3203_v47 = vld [vmem:[%s313_s16] sm:$0xff]  }
  0x85   : > { %3547 = vmatpush3.bf16.msra.mxu0 %v3764_v1  ;;  %v2033_v58 = vrot.slane %v2032_v51, 4  ;;  %v3121_v1 = vld [vmem:[%s3901_s30 + $0x14] sm:$0x1]  ;;  %v2295_v51 = vrot.slane %v3133_v45, 5  ;;  %3580 = vmatprep.subr.bf16.mxu1 %v3777_v57 }
  0x86   : > { %3556 = vmatprep.subr.bf16.mxu0 %v3767_v13  ;;  %v2271_v8 = vrot.slane %v3121_v1, 5  ;;  %v2052_v12 = vsel %vm3925_vm2, %v2047_v0, %v2051_v59  ;;  %v3779_v59 = vld [vmem:[%s4351_s3 + $0x10] sm:$0xff]  }
  0x87   : > { %3453 = vmatmul.mubr.bf16.vlgmr.msra.gmra.mrb[0].mxu1 %v3766_v15  ;;  %v2038_v5 = vsel %vm3925_vm2, %v2033_v58, %v2037_v43  ;;  %v2276_v15 = vsel %vm4012_vm5, %v3137_v9, %v2275_v11  ;;  %v2288_v43 = vsel %vm4012_vm5, %v3140_v36, %v2287_v37  ;;  %v3778_v58 = vld [vmem:[%s4351_s3 + $0x8] sm:$0xff]   ;;  %v3172_v9 = vld [vmem:[%s4350_s2] ss:$0 sm:$0xff] }
  0x88   : > { %3549 = vmatmul.mubr.bf16.vlgmr.msra.gmra.mrb[0].mxu0 %v3109_v24  ;;  %3456 = vmatprep.mubr.bf16.mxu1 %v3769_v20  ;;  %v3110_v10 = vcombine.low %v2024_v63, %v2038_v5  ;;  %v2272_v14 = vsel %vm4012_vm5, %v3136_v3, %v2271_v8  ;;  %v3126_v24 = vld [vmem:[%s3901_s30 + $0x28] sm:$0xe]  ;;  %v3162_v50 = vcombine.low %v2288_v43, %v2292_v44  ;;  %v3784_v63 = vld [vmem:[%s4351_s3 + $0x38] sm:$0xff]  }
  0x89   : > { %3557 = vmatpush3.bf16.msra.mxu0 %v3767_v13  ;;  %v2061_v13 = vrot.slane %v2060_v6, 4  ;;  %v3160_v20 = vcombine.low %v2272_v14, %v2276_v15  ;;  %v3139_v32 = vrot.slane %v3126_v24, 9  ;;  %3581 = vmatpush3.bf16.msra.mxu1 %v3777_v57  ;;  %v3205_v57 = vunpack.c.h.bf16 %v3203_v47 }
  0x8a   : > { %3558 = vmatprep.subr.bf16.mxu0 %v3768_v25  ;;  %3552 = vmatprep.mubr.bf16.mxu0 %v3110_v10 }
  0x8b   : > { %v2066_v17 = vsel %vm3925_vm2, %v2061_v13, %v2065_v61  ;;  %3582 = vmatprep.subr.bf16.mxu1 %v3778_v58  ;;  %v3782_v61 = vld [vmem:[%s4351_s3 + $0x28] sm:$0xff]  }
  0x8c   : > { %v3111_v19 = vcombine.low %v2052_v12, %v2066_v17 }
  0x8d   : > { %3559 = vmatpush3.bf16.msra.mxu0 %v3768_v25  ;;  %v3127_v25 = vld [vmem:[%s3901_s30 + $0x2c] sm:$0x1]  ;;  %3583 = vmatpush3.bf16.msra.mxu1 %v3778_v58 }
  0x8e   : > { %3560 = vmatprep.subr.bf16.mxu0 %v3771_v46  ;;  %v2283_v34 = vrot.slane %v3127_v25, 5  ;;  %3584 = vmatprep.subr.bf16.mxu1 %v3779_v59 }
  0x8f   : > { %3457 = vmatmul.mubr.bf16.gmra.mrb[4].mxu1 %v3770_v54  ;;  %v2296_v54 = vsel %vm4012_vm5, %v3142_v49, %v2295_v51  ;;  %v3204_v51 = vunpack.c.l.bf16 %v3203_v47 }
  0x90   : > { %3553 = vmatmul.mubr.bf16.gmra.mrb[4].mxu0 %v3111_v19  ;;  %v2284_v41 = vsel %vm4012_vm5, %v3139_v32, %v2283_v34 }
  0x91   : > { %3561 = vmatpush3.bf16.msra.mxu0 %v3771_v46  ;;  %3572 = vmatprep.mubr.bf16.mxu0 %v3160_v20  ;;  %v3134_v46 = vld [vmem:[%s3901_s30 + $0x48] sm:$0xe]  ;;  %v3161_v48 = vcombine.low %v2280_v40, %v2284_v41 }
  0x92   : > { %3562 = vmatprep.subr.bf16.mxu0 %v3772_v4  ;;  %v3143_v52 = vrot.slane %v3134_v46, 9  ;;  %3585 = vmatpush3.bf16.msra.mxu1 %v3779_v59  ;;  %v3238_v46 = vld [vmem:[%s313_s16 + $0x8] sm:$0xff]  }
  0x93   : > { %3586 = vmatprep.subr.bf16.mxu1 %v3780_v18  ;;  %v3208_v49 = vunpack.c.l.bf16 %v3238_v46 }
  0x94   : > { %v2300_v55 = vsel %vm4012_vm5, %v3143_v52, %v2299_v53 }
  0x95   : > { %3563 = vmatpush3.bf16.msra.mxu0 %v3772_v4  ;;  %v3163_v56 = vcombine.low %v2296_v54, %v2300_v55  ;;  %v3209_v54 = vunpack.c.h.bf16 %v3238_v46 }
  0x96   : > { %3564 = vmatprep.subr.bf16.mxu0 %v3773_v16  ;;  %3587 = vmatpush3.bf16.msra.mxu1 %v3780_v18 }
  0x97   : > { %3588 = vmatprep.subr.bf16.mxu1 %v3781_v60 }
  0x99   : > { %3565 = vmatpush3.bf16.msra.mxu0 %v3773_v16 }
  0x9a   : > { %3566 = vmatprep.subr.bf16.mxu0 %v3774_v21  ;;  %3589 = vmatpush3.bf16.msra.mxu1 %v3781_v60 }
  0x9b   : > { %3590 = vmatprep.subr.bf16.mxu1 %v3782_v61 }
  0x9d   : > { %3567 = vmatpush3.bf16.msra.mxu0 %v3774_v21 }
  0x9e   : > { %3568 = vmatprep.subr.bf16.mxu0 %v3775_v22  ;;  %3591 = vmatpush3.bf16.msra.mxu1 %v3782_v61 }
  0x9f   : > { %3592 = vmatprep.subr.bf16.mxu1 %v3783_v62 }
  0xa1   : > { %3569 = vmatpush3.bf16.msra.mxu0 %v3775_v22 }
  0xa2   : > { %3570 = vmatprep.subr.bf16.mxu0 %v3776_v35  ;;  %3593 = vmatpush3.bf16.msra.mxu1 %v3783_v62  ;;  %v3240_v62 = vld [vmem:[%s313_s16 + $0x18] sm:$0xff]  }
  0xa3   : > { %3594 = vmatprep.subr.bf16.mxu1 %v3784_v63 }
  0xa5   : > { %3571 = vmatpush3.bf16.msra.mxu0 %v3776_v35 }
  0xa6   : > { %3595 = vmatpush3.bf16.msra.mxu1 %v3784_v63 }
  0xa8   : > { %3573 = vmatmul.mubr.bf16.vlgmr.msra.gmra.mrb[0].mxu0 %v3161_v48  ;;  %v3173_v48 = vld [vmem:[%s4352_s4] ss:$0 sm:$0xff] }
  0xa9   : > { %3576 = vmatprep.mubr.bf16.mxu0 %v3162_v50 }
  0xb0   : > { %3577 = vmatmul.mubr.bf16.gmra.mrb[4].mxu0 %v3163_v56 }
 0x15a   : > { %v3454_v0 = vpop.f32.mrb[0].mxu1 }
 0x15b   : > { %v1165_v1 = vpop.f32.mrb[1].mxu1 }
 0x15c   : > { %v3455_v2 = vpop.f32.mrb[2].mxu1 }
 0x15d   : > { %v1168_v3 = vpop.f32.mrb[3].mxu1 }
 0x162   : > { %v3458_v4 = vpop.f32.mrb[4].mxu1 }
 0x163   : > { %v1181_v5 = vpop.f32.mrb[5].mxu1 }
 0x164   : > { %v3459_v6 = vpop.f32.mrb[6].mxu1 }
 0x165   : > { %v1184_v7 = vpop.f32.mrb[7].mxu1 }
 0x17b   : > { %v3574_v8 = vpop.f32.mrb[0].mxu0 }
 0x17c   : > { %v3604_v10 = vadd.f32 %v3574_v8, %v3454_v0  ;;  %v2416_v11 = vpop.f32.mrb[1].mxu0  ;;  %v3239_v0 = vld [vmem:[%s313_s16 + $0x10] sm:$0xff]  }
 0x17d   : > { %v3605_v12 = vadd.f32 %v2416_v11, %v1165_v1  ;;  %v3575_v13 = vpop.f32.mrb[2].mxu0  ;;  %v3212_v8 = vunpack.c.l.bf16 %v3239_v0 }
 0x17e   : > { %v2488_v14 = vadd.f32 %v3604_v10, %v3172_v9  ;;  %v3606_v15 = vadd.f32 %v3575_v13, %v3455_v2  ;;  %v2419_v16 = vpop.f32.mrb[3].mxu0 }
 0x17f   : > { %v2486_v17 = vadd.f32 %v3605_v12, %v3172_v9  ;;  %v3607_v19 = vadd.f32 %v2419_v16, %v1168_v3  ;;  %v3217_v12 = vunpack.c.h.bf16 %v3240_v62  ;;  %v3213_v16 = vunpack.c.h.bf16 %v3239_v0 }
 0x180   : > { %v2489_v20 = vadd.f32 %v3606_v15, %v3172_v9  ;;  %v2496_v22 = vmax.f32 %v2488_v14, 0.0 }
 0x181   : > { %v2487_v21 = vadd.f32 %v3607_v19, %v3172_v9  ;;  %v2494_v33 = vmax.f32 %v2486_v17, 0.0 }
 0x182   : > { %v2497_v23 = vmax.f32 %v2489_v20, 0.0 }
 0x183   : > { %v2495_v24 = vmax.f32 %v2487_v21, 0.0  ;;  %v3578_v25 = vpop.f32.mrb[4].mxu0 }
 0x184   : > { %v2503_v26 = vpack.c.bf16 %v2497_v23, %v2496_v22  ;;  %v3608_v27 = vadd.f32 %v3578_v25, %v3458_v4  ;;  %v2432_v28 = vpop.f32.mrb[5].mxu0  ;;  %v3216_v4 = vunpack.c.l.bf16 %v3240_v62 }
 0x185   : > { %v3609_v29 = vadd.f32 %v2432_v28, %v1181_v5  ;;  %v3579_v30 = vpop.f32.mrb[6].mxu0  ;;  %v2502_v31 = vpack.c.bf16 %v2495_v24, %v2494_v33 }
 0x186   : > { %v2492_v32 = vadd.f32 %v3608_v27, %v3172_v9  ;;  %v3610_v34 = vadd.f32 %v3579_v30, %v3459_v6  ;;  %v2435_v35 = vpop.f32.mrb[7].mxu0 }
 0x187   : > { %v2490_v36 = vadd.f32 %v3609_v29, %v3172_v9  ;;  %v3611_v37 = vadd.f32 %v2435_v35, %v1184_v7  ;;  %3596 = vmatprep.mubr.bf16.mxu1 %v2502_v31 }
 0x188   : > { %v2493_v38 = vadd.f32 %v3610_v34, %v3172_v9  ;;  %3597 = vmatmul.mubr.bf16.vlgmr.msra.gmra.mrb[8].mxu1 %v2503_v26  ;;  %v2500_v40 = vmax.f32 %v2492_v32, 0.0 }
 0x189   : > { %v2491_v39 = vadd.f32 %v3611_v37, %v3172_v9  ;;  %v2498_v42 = vmax.f32 %v2490_v36, 0.0 }
 0x18a   : > { %v2501_v41 = vmax.f32 %v2493_v38, 0.0 }
 0x18b   : > { %v2499_v43 = vmax.f32 %v2491_v39, 0.0 }
 0x18c   : > { %v2505_v44 = vpack.c.bf16 %v2501_v41, %v2500_v40 }
 0x18d   : > { %v2504_v45 = vpack.c.bf16 %v2499_v43, %v2498_v42 }
 0x18f   : > { %3600 = vmatprep.mubr.bf16.mxu1 %v2504_v45 }
 0x190   : > { %3601 = vmatmul.mubr.bf16.gmra.mrb[12].mxu1 %v2505_v44 }
 0x25b   : > { %v3598_v50 = vpop.f32.mrb[8].mxu1 }
 0x25c   : > { %v2620_v52 = vadd.f32 %v3598_v50, %v3173_v48  ;;  %v2611_v53 = vpop.f32.mrb[9].mxu1 }
 0x25d   : > { %v2612_v55 = vadd.f32 %v3173_v48, %v2611_v53  ;;  %v3599_v56 = vpop.f32.mrb[10].mxu1 }
 0x25e   : > { %v2660_v58 = vadd.f32 %v3208_v49, %v2620_v52  ;;  %v2623_v59 = vadd.f32 %v3599_v56, %v3173_v48  ;;  %v2614_v18 = vpop.f32.mrb[11].mxu1 }
 0x25f   : > { %v2658_v60 = vadd.f32 %v3204_v51, %v2612_v55  ;;  %v2615_v61 = vadd.f32 %v3173_v48, %v2614_v18 }
 0x260   : > { %v2661_v63 = vadd.f32 %v3209_v54, %v2623_v59  ;;  %v2668_v2 = vmax.f32 %v2660_v58, 0.0 }
 0x261   : > { %v2659_v1 = vadd.f32 %v3205_v57, %v2615_v61  ;;  %v2666_v5 = vmax.f32 %v2658_v60, 0.0 }
 0x262   : > { %v2669_v3 = vmax.f32 %v2661_v63, 0.0 }
 0x263   : > { %v2667_v6 = vmax.f32 %v2659_v1, 0.0  ;;  %v3602_v7 = vpop.f32.mrb[12].mxu1 }
 0x264   : > { %v3226_v9 = vpack.c.bf16 %v2669_v3, %v2668_v2  ;;  %v2636_v10 = vadd.f32 %v3602_v7, %v3173_v48  ;;  %v2627_v11 = vpop.f32.mrb[13].mxu1 }
 0x265   : > { %v3221_v13 = vpack.c.bf16 %v2667_v6, %v2666_v5  ;;  %v2628_v14 = vadd.f32 %v3173_v48, %v2627_v11  ;;  %v3603_v15 = vpop.f32.mrb[14].mxu1 }
 0x266   : > { %3241 = vst [vmem:[%s323_s19 + $0x8] sm:$0xff] %v3226_v9   ;;  %v2664_v17 = vadd.f32 %v3216_v4, %v2636_v10  ;;  %v2639_v19 = vadd.f32 %v3603_v15, %v3173_v48  ;;  %v2630_v20 = vpop.f32.mrb[15].mxu1 }
 0x267   : > { %3222 = vst [vmem:[%s323_s19] sm:$0xff] %v3221_v13   ;;  %v2662_v21 = vadd.f32 %v3212_v8, %v2628_v14  ;;  %v2631_v22 = vadd.f32 %v3173_v48, %v2630_v20 }
 0x268   : > { %v2665_v23 = vadd.f32 %v3217_v12, %v2639_v19  ;;  %v2672_v24 = vmax.f32 %v2664_v17, 0.0 }
 0x269   : > { %v2663_v33 = vadd.f32 %v3213_v16, %v2631_v22  ;;  %v2670_v26 = vmax.f32 %v2662_v21, 0.0 }
 0x26a   : > { %v2673_v25 = vmax.f32 %v2665_v23, 0.0 }
 0x26b   : > { %v2671_v27 = vmax.f32 %v2663_v33, 0.0 }
 0x26c   : > { %v3236_v28 = vpack.c.bf16 %v2673_v25, %v2672_v24 }
 0x26d   : > { %v3231_v29 = vpack.c.bf16 %v2671_v27, %v2670_v26 }
 0x26e   : > { %3243 = vst [vmem:[%s323_s19 + $0x18] sm:$0xff] %v3236_v28  }
 0x26f   : > { %3242 = vst [vmem:[%s323_s19 + $0x10] sm:$0xff] %v3231_v29  }
 0x270 PF: > { %s16_s23 = sadd.s32 1, %s3807_s23   ;;  %s4359_s21 = smov %s3803_s22 }
 0x271   : > { %p13_p5 = scmp.ge.s32.totalorder %s16_s23, 4   ;;  %s4360_s22 = smov %s4362_s24 }
 0x273   :  { %15 = sbr.rel (!%p13_p5) target bundleno = 2 (0x2), region = 87 }

</bundles_post_ra>
